<compile_context>
chip_gen: v7x
topology: tpu7x:2x2x1
jax: 0.10.0
libtpu: 0.0.40
codegen_flags: <defaults>
</compile_context>

<pallas_src>
import functools
from dataclasses import dataclass

import numpy as np
import jax
import jax.numpy as jnp
from jax.experimental import pallas as pl
from jax.experimental.pallas import tpu as pltpu

LANE = 128


def _round_up(x, m):
    return (x + m - 1) // m * m


@dataclass(frozen=True)
class _LayerPlan:
    k: int
    stride: int
    p: int
    cp_in: int
    cp_out: int
    wphys: int      # physical (row-major) width of this layer's input
    wlog: int       # logical (valid) width of this layer's input
    hin: int
    ho: int         # conv output height
    wo_log: int     # conv output logical width
    hp: int         # pooled height
    wp_phys: int    # pooled physical width (= next layer's wphys)
    wp_log: int     # pooled logical width
    mok: int        # rows computed by the conv matmul
    lw: int         # rows after the W-window max
    lh: int         # rows after the H-window max (K dim of the select matmul)
    m_in_pad: int   # padded flat length of this layer's input
    m_out_pad: int  # padded flat length of this layer's output


def _make_plans(H, W, num_channels, k, stride, p):
    """Static per-layer geometry for the fused conv+pool kernels."""
    raw = []
    hin, wphys, wlog = H, W, W
    for i in range(len(num_channels) - 1):
        cin, cout = num_channels[i], num_channels[i + 1]
        assert hin >= k and wlog >= k, "spatial dims too small for the kernel"
        ho = (hin - k) // stride + 1
        wo_log = (wlog - k) // stride + 1
        hp, wp_phys, wp_log = ho // p, wphys // p, wo_log // p
        assert hp >= 1 and wp_log >= 1, "pooled output is empty"
        mo = ho * wphys
        lh = _round_up(mo, 8)
        mok = lh + (p - 1) * (wphys + 1)
        lw = mok - (p - 1)
        m_in_needed = (k - 1) * (wphys + 1) + stride * (mok - 1) + 1
        m_in_pad = _round_up(max(m_in_needed, hin * wphys), 16)
        raw.append(dict(
            k=k, stride=stride, p=p,
            cp_in=_round_up(cin, LANE), cp_out=_round_up(cout, LANE),
            wphys=wphys, wlog=wlog, hin=hin, ho=ho, wo_log=wo_log,
            hp=hp, wp_phys=wp_phys, wp_log=wp_log,
            mok=mok, lw=lw, lh=lh, m_in_pad=m_in_pad, m_out_pad=-1))
        hin, wphys, wlog = hp, wp_phys, wp_log
    # Each layer's output padding == the NEXT layer's required input padding,
    # so consumers never have to pad/slice activations in HBM.
    for i in range(len(raw)):
        if i + 1 < len(raw):
            raw[i]["m_out_pad"] = raw[i + 1]["m_in_pad"]
        else:
            raw[i]["m_out_pad"] = _round_up(raw[i]["hp"] * raw[i]["wp_phys"], 16)
    return [_LayerPlan(**d) for d in raw]


def _pool_select_matrix(plan):
    """0/1 matrix selecting pooled rows out of the window-maxed conv rows.

    Rows >= hp*wp_phys are all-zero, which directly produces the zero padding
    the next layer needs (no wrapper-side jnp.pad between layers).
    """
    s = np.zeros((plan.m_out_pad, plan.lh), np.float32)
    o = np.arange(plan.hp * plan.wp_phys)
    idx = (o // plan.wp_phys) * (plan.p * plan.wphys) + (o % plan.wp_phys) * plan.p
    s[o, idx] = 1.0
    return jnp.asarray(s)


# ---------------- Pallas kernels ----------------

def _conv_relu_pool_kernel(x_ref, w_ref, b_ref, s_ref, o_ref, *,
                           k, stride, p, wphys, mok, lw, lh):
    """Fused Conv2d(+bias) -> ReLU -> MaxPool2d for one image.

    x_ref : (1, m_in_pad, cp_in)   row-major flattened (H*Wphys, C) input, f32
    w_ref : (k*k, cp_in, cp_out)   per-tap weight matrices (MXU dtype, bf16)
    b_ref : (1, cp_out)            bias, f32
    s_ref : (m_out_pad, lh)        0/1 pooling row-selection matrix, f32
    o_ref : (1, m_out_pad, cp_out) pooled output (flattened, padded), f32
    """
    mxu_dtype = w_ref.dtype

    # conv as k*k shifted matmuls (im2col fused: each tap is just a shifted
    # slice of the VMEM-resident input slab), f32 accumulation.
    acc = None
    for di in range(k):
        for dj in range(k):
            off = di * wphys + dj
            if stride == 1:
                slab = x_ref[0, off:off + mok, :]
            else:
                slab = x_ref[0, pl.ds(off, mok, stride=stride), :]
            tap = jnp.dot(slab.astype(mxu_dtype), w_ref[di * k + dj],
                          preferred_element_type=jnp.float32)
            acc = tap if acc is None else acc + tap

    # f32 epilogue: bias + ReLU.
    y = jnp.maximum(acc + b_ref[...], 0.0)

    # max-pool window max via shifted slices (W window, then H window) ...
    yw = y[0:lw, :]
    for pj in range(1, p):
        yw = jnp.maximum(yw, y[pj:pj + lw, :])
    yh = yw[0:lh, :]
    for pi in range(1, p):
        yh = jnp.maximum(yh, yw[pi * wphys:pi * wphys + lh, :])

    # ... then the stride-p row downsample as an exact 0/1 selection matmul.
    o_ref[0] = jnp.dot(s_ref[...], yh,
                       preferred_element_type=jnp.float32).astype(o_ref.dtype)


def _l2norm_kernel(x_ref, o_ref):
    # row-wise L2 normalize, matching F.normalize(p=2, dim=1, eps=1e-12)
    x = x_ref[...].astype(jnp.float32)
    nrm = jnp.sqrt(jnp.sum(x * x, axis=1, keepdims=True))
    o_ref[...] = (x / jnp.maximum(nrm, 1e-12)).astype(o_ref.dtype)


# ---------------- wrappers ----------------

def _conv_relu_pool_layer(x_flat, wmat, bias, smat, plan):
    n = x_flat.shape[0]
    kern = functools.partial(
        _conv_relu_pool_kernel, k=plan.k, stride=plan.stride, p=plan.p,
        wphys=plan.wphys, mok=plan.mok, lw=plan.lw, lh=plan.lh)
    return pl.pallas_call(
        kern,
        grid=(n,),
        in_specs=[
            pl.BlockSpec((1, plan.m_in_pad, plan.cp_in), lambda i: (i, 0, 0)),
            pl.BlockSpec((plan.k * plan.k, plan.cp_in, plan.cp_out),
                         lambda i: (0, 0, 0)),
            pl.BlockSpec((1, plan.cp_out), lambda i: (0, 0)),
            pl.BlockSpec((plan.m_out_pad, plan.lh), lambda i: (0, 0)),
        ],
        out_specs=pl.BlockSpec((1, plan.m_out_pad, plan.cp_out),
                               lambda i: (i, 0, 0)),
        out_shape=jax.ShapeDtypeStruct((n, plan.m_out_pad, plan.cp_out),
                                       x_flat.dtype),
        compiler_params=pltpu.CompilerParams(
            dimension_semantics=("parallel",)),
    )(x_flat, wmat, bias, smat)


def l2_normalize(x2d, block_rows=8):
    b, f = x2d.shape
    bp = _round_up(b, block_rows)
    xp = jnp.pad(x2d, ((0, bp - b), (0, 0)))
    out = pl.pallas_call(
        _l2norm_kernel,
        grid=(bp // block_rows,),
        in_specs=[pl.BlockSpec((block_rows, f), lambda i: (i, 0))],
        out_specs=pl.BlockSpec((block_rows, f), lambda i: (i, 0)),
        out_shape=jax.ShapeDtypeStruct((bp, f), x2d.dtype),
        compiler_params=pltpu.CompilerParams(
            dimension_semantics=("parallel",)),
    )(xp)
    return out[:b]


class FastGradExtractorPallas:
    """Pallas port of FastGradExtractor's forward pass.

    FastGradConv2d's forward == plain Conv2d (stride=`stride`, no padding);
    the fast-per-example-grad bookkeeping does not affect forward semantics.
    """

    def __init__(self, num_channels, kernel_size, stride, pool_size,
                 normalize=False, key=None, mxu_dtype=jnp.bfloat16):
        assert len(num_channels) >= 2
        if key is None:
            key = jax.random.PRNGKey(0)
        self.num_channels = list(num_channels)
        self.kernel_size = kernel_size
        self.stride = stride
        self.pool_size = pool_size
        self.normalize = normalize
        self.mxu_dtype = mxu_dtype
        self._plan_cache = {}

        self.params = []   # PyTorch-layout (Cout, Cin, k, k) f32 weights
        self._wmats = []   # (k*k, cp_in, cp_out) padded, MXU-dtype weights
        self._biases = []  # (1, cp_out) padded f32 biases
        k = kernel_size
        for i in range(len(num_channels) - 1):
            cin, cout = num_channels[i], num_channels[i + 1]
            key, kw, kb = jax.random.split(key, 3)
            fan_in = cin * k * k
            bound = 1.0 / (fan_in ** 0.5)   # PyTorch Conv2d default init range
            w = jax.random.uniform(kw, (cout, cin, k, k), jnp.float32,
                                   -bound, bound)
            b = jax.random.uniform(kb, (cout,), jnp.float32, -bound, bound)
            self.params.append((w, b))

            cp_in, cp_out = _round_up(cin, LANE), _round_up(cout, LANE)
            # (Cout, Cin, k, k) -> (di, dj, ci, co) -> (k*k, cp_in, cp_out)
            wmat = jnp.transpose(w, (2, 3, 1, 0)).reshape(k * k, cin, cout)
            wmat = jnp.pad(wmat, ((0, 0), (0, cp_in - cin), (0, cp_out - cout)))
            self._wmats.append(wmat.astype(mxu_dtype))
            self._biases.append(
                jnp.pad(b.reshape(1, cout), ((0, 0), (0, cp_out - cout))))

    def _plans(self, H, W):
        key = (H, W)
        if key not in self._plan_cache:
            plans = _make_plans(H, W, self.num_channels, self.kernel_size,
                                self.stride, self.pool_size)
            smats = [_pool_select_matrix(p) for p in plans]
            self._plan_cache[key] = (plans, smats)
        return self._plan_cache[key]

    def __call__(self, x_nchw):
        n, cin, H, W = x_nchw.shape
        assert cin == self.num_channels[0]
        plans, smats = self._plans(H, W)
        p0 = plans[0]

        # One-time entry formatting: NCHW -> NHWC, channels padded to the lane
        # width, spatial grid flattened row-major, flat dim padded so that the
        # first layer's shifted slab reads stay in bounds.
        x = jnp.transpose(x_nchw, (0, 2, 3, 1)).astype(jnp.float32)
        x = jnp.pad(x, ((0, 0), (0, 0), (0, 0), (0, p0.cp_in - cin)))
        x = x.reshape(n, H * W, p0.cp_in)
        x = jnp.pad(x, ((0, 0), (0, p0.m_in_pad - H * W), (0, 0)))

        for plan, wmat, bias, smat in zip(plans, self._wmats, self._biases,
                                          smats):
            x = _conv_relu_pool_layer(x, wmat, bias, smat, plan)

        # Extract the valid (N, Hp, Wp_log, Cout) region of the last layer and
        # flatten in PyTorch NCHW order (== x.view(N, -1) on an NCHW tensor).
        last = plans[-1]
        cout = self.num_channels[-1]
        feat = x[:, :last.hp * last.wp_phys, :cout]
        feat = feat.reshape(n, last.hp, last.wp_phys, cout)[:, :, :last.wp_log, :]
        feat = jnp.transpose(feat, (0, 3, 1, 2)).reshape(n, -1)
        if self.normalize:
            feat = l2_normalize(feat)
        return feat


def _reference_forward(x_nchw, params, stride, pool, normalize):
    """Pure-JAX (XLA) reference of the PyTorch forward, for validation."""
    x = x_nchw
    for w, b in params:
        x = jax.lax.conv_general_dilated(
            x, w, window_strides=(stride, stride), padding="VALID",
            dimension_numbers=("NCHW", "OIHW", "NCHW"))
        x = jax.nn.relu(x + b.reshape(1, -1, 1, 1))
        n, c, h, wd = x.shape
        hp, wp = h // pool, wd // pool
        x = x[:, :, :hp * pool, :wp * pool]
        x = x.reshape(n, c, hp, pool, wp, pool).max(axis=(3, 5))
    out = x.reshape(x.shape[0], -1)
    if normalize:
        nrm = jnp.sqrt(jnp.sum(out * out, axis=1, keepdims=True))
        out = out / jnp.maximum(nrm, 1e-12)
    return out


if __name__ == "__main__":
    key = jax.random.PRNGKey(0)
    k_x, k_params = jax.random.split(key)

    # small shapes: batch=2, in_channels=4, spatial 16x16
    x = jax.random.normal(k_x, (2, 4, 16, 16), jnp.float32)

    model = FastGradExtractorPallas(
        num_channels=[4, 8, 8], kernel_size=3, stride=1, pool_size=2,
        normalize=True, key=k_params)

    out = jax.block_until_ready(model(x))

    # layer1: conv 16->14, pool->7 ; layer2: conv 7->5, pool->2  => (2, 8*2*2)
    assert out.shape == (2, 32), out.shape
    assert bool(jnp.all(jnp.isfinite(out)))

    # cross-check against a pure-JAX reference (loose tol: bf16 MXU operands)
    ref = jax.block_until_ready(
        _reference_forward(x, model.params, model.stride, model.pool_size,
                           model.normalize))
    np.testing.assert_allclose(np.asarray(out), np.asarray(ref),
                               rtol=0.0, atol=5e-2)

    print("KERNEL_OK")
</pallas_src>

<mosaic_0001>
module attributes {stable_mosaic.version = 11 : i64} {
  func.func @_conv_relu_pool_kernel(%arg0: i32, %arg1: memref<1x288x128xf32, #tpu.memory_space<vmem>>, %arg2: memref<9x128x128xbf16, #tpu.memory_space<vmem>>, %arg3: memref<1x128xf32, #tpu.memory_space<vmem>>, %arg4: memref<80x224xf32, #tpu.memory_space<vmem>>, %arg5: memref<1x80x128xf32, #tpu.memory_space<vmem>>) attributes {dimension_semantics = [#tpu.dimension_semantics<parallel>], iteration_bounds = array<i64: 2>, scalar_prefetch = 0 : i64, scratch_operands = 0 : i64, tpu.core_type = #tpu.core_type<tc>, window_params = [{transform_indices = @transform_0, window_bounds = array<i64: 1, 288, 128>}, {pipeline_mode = #tpu.pipeline_mode<synchronous>, transform_indices = @transform_1, window_bounds = array<i64: 9, 128, 128>}, {pipeline_mode = #tpu.pipeline_mode<synchronous>, transform_indices = @transform_2, window_bounds = array<i64: 1, 128>}, {pipeline_mode = #tpu.pipeline_mode<synchronous>, transform_indices = @transform_3, window_bounds = array<i64: 80, 224>}, {transform_indices = @transform_4, window_bounds = array<i64: 1, 80, 128>}]} {
    %c0 = arith.constant 0 : index
    %c0_0 = arith.constant 0 : index
    %c0_1 = arith.constant 0 : index
    %0 = vector.load %arg1[%c0, %c0_0, %c0_1] : memref<1x288x128xf32, #tpu.memory_space<vmem>>, vector<1x241x128xf32>
    %1 = vector.shape_cast %0 : vector<1x241x128xf32> to vector<241x128xf32>
    %2 = arith.truncf %1 : vector<241x128xf32> to vector<241x128xbf16>
    %c0_2 = arith.constant 0 : index
    %c0_3 = arith.constant 0 : index
    %c0_4 = arith.constant 0 : index
    %3 = vector.load %arg2[%c0_2, %c0_3, %c0_4] : memref<9x128x128xbf16, #tpu.memory_space<vmem>>, vector<1x128x128xbf16>
    %4 = vector.shape_cast %3 : vector<1x128x128xbf16> to vector<128x128xbf16>
    %cst = arith.constant dense<0.000000e+00> : vector<241x128xf32>
    %5 = tpu.matmul %2, %4, %cst {dimension_numbers = #tpu.dot_dimension_numbers<[1], [0], [0], [1], [0, 0, 1, 1], [], []>} : vector<241x128xbf16>, vector<128x128xbf16>, vector<241x128xf32> -> vector<241x128xf32>
    %c0_5 = arith.constant 0 : index
    %c1 = arith.constant 1 : index
    %c0_6 = arith.constant 0 : index
    %6 = vector.load %arg1[%c0_5, %c1, %c0_6] : memref<1x288x128xf32, #tpu.memory_space<vmem>>, vector<1x241x128xf32>
    %7 = vector.shape_cast %6 : vector<1x241x128xf32> to vector<241x128xf32>
    %8 = arith.truncf %7 : vector<241x128xf32> to vector<241x128xbf16>
    %c1_7 = arith.constant 1 : index
    %c0_8 = arith.constant 0 : index
    %c0_9 = arith.constant 0 : index
    %9 = vector.load %arg2[%c1_7, %c0_8, %c0_9] : memref<9x128x128xbf16, #tpu.memory_space<vmem>>, vector<1x128x128xbf16>
    %10 = vector.shape_cast %9 : vector<1x128x128xbf16> to vector<128x128xbf16>
    %cst_10 = arith.constant dense<0.000000e+00> : vector<241x128xf32>
    %11 = tpu.matmul %8, %10, %cst_10 {dimension_numbers = #tpu.dot_dimension_numbers<[1], [0], [0], [1], [0, 0, 1, 1], [], []>} : vector<241x128xbf16>, vector<128x128xbf16>, vector<241x128xf32> -> vector<241x128xf32>
    %12 = arith.addf %5, %11 : vector<241x128xf32>
    %c0_11 = arith.constant 0 : index
    %c2 = arith.constant 2 : index
    %c0_12 = arith.constant 0 : index
    %13 = vector.load %arg1[%c0_11, %c2, %c0_12] : memref<1x288x128xf32, #tpu.memory_space<vmem>>, vector<1x241x128xf32>
    %14 = vector.shape_cast %13 : vector<1x241x128xf32> to vector<241x128xf32>
    %15 = arith.truncf %14 : vector<241x128xf32> to vector<241x128xbf16>
    %c2_13 = arith.constant 2 : index
    %c0_14 = arith.constant 0 : index
    %c0_15 = arith.constant 0 : index
    %16 = vector.load %arg2[%c2_13, %c0_14, %c0_15] : memref<9x128x128xbf16, #tpu.memory_space<vmem>>, vector<1x128x128xbf16>
    %17 = vector.shape_cast %16 : vector<1x128x128xbf16> to vector<128x128xbf16>
    %cst_16 = arith.constant dense<0.000000e+00> : vector<241x128xf32>
    %18 = tpu.matmul %15, %17, %cst_16 {dimension_numbers = #tpu.dot_dimension_numbers<[1], [0], [0], [1], [0, 0, 1, 1], [], []>} : vector<241x128xbf16>, vector<128x128xbf16>, vector<241x128xf32> -> vector<241x128xf32>
    %19 = arith.addf %12, %18 : vector<241x128xf32>
    %c0_17 = arith.constant 0 : index
    %c16 = arith.constant 16 : index
    %c0_18 = arith.constant 0 : index
    %20 = vector.load %arg1[%c0_17, %c16, %c0_18] : memref<1x288x128xf32, #tpu.memory_space<vmem>>, vector<1x241x128xf32>
    %21 = vector.shape_cast %20 : vector<1x241x128xf32> to vector<241x128xf32>
    %22 = arith.truncf %21 : vector<241x128xf32> to vector<241x128xbf16>
    %c3 = arith.constant 3 : index
    %c0_19 = arith.constant 0 : index
    %c0_20 = arith.constant 0 : index
    %23 = vector.load %arg2[%c3, %c0_19, %c0_20] : memref<9x128x128xbf16, #tpu.memory_space<vmem>>, vector<1x128x128xbf16>
    %24 = vector.shape_cast %23 : vector<1x128x128xbf16> to vector<128x128xbf16>
    %cst_21 = arith.constant dense<0.000000e+00> : vector<241x128xf32>
    %25 = tpu.matmul %22, %24, %cst_21 {dimension_numbers = #tpu.dot_dimension_numbers<[1], [0], [0], [1], [0, 0, 1, 1], [], []>} : vector<241x128xbf16>, vector<128x128xbf16>, vector<241x128xf32> -> vector<241x128xf32>
    %26 = arith.addf %19, %25 : vector<241x128xf32>
    %c0_22 = arith.constant 0 : index
    %c17 = arith.constant 17 : index
    %c0_23 = arith.constant 0 : index
    %27 = vector.load %arg1[%c0_22, %c17, %c0_23] : memref<1x288x128xf32, #tpu.memory_space<vmem>>, vector<1x241x128xf32>
    %28 = vector.shape_cast %27 : vector<1x241x128xf32> to vector<241x128xf32>
    %29 = arith.truncf %28 : vector<241x128xf32> to vector<241x128xbf16>
    %c4 = arith.constant 4 : index
    %c0_24 = arith.constant 0 : index
    %c0_25 = arith.constant 0 : index
    %30 = vector.load %arg2[%c4, %c0_24, %c0_25] : memref<9x128x128xbf16, #tpu.memory_space<vmem>>, vector<1x128x128xbf16>
    %31 = vector.shape_cast %30 : vector<1x128x128xbf16> to vector<128x128xbf16>
    %cst_26 = arith.constant dense<0.000000e+00> : vector<241x128xf32>
    %32 = tpu.matmul %29, %31, %cst_26 {dimension_numbers = #tpu.dot_dimension_numbers<[1], [0], [0], [1], [0, 0, 1, 1], [], []>} : vector<241x128xbf16>, vector<128x128xbf16>, vector<241x128xf32> -> vector<241x128xf32>
    %33 = arith.addf %26, %32 : vector<241x128xf32>
    %c0_27 = arith.constant 0 : index
    %c18 = arith.constant 18 : index
    %c0_28 = arith.constant 0 : index
    %34 = vector.load %arg1[%c0_27, %c18, %c0_28] : memref<1x288x128xf32, #tpu.memory_space<vmem>>, vector<1x241x128xf32>
    %35 = vector.shape_cast %34 : vector<1x241x128xf32> to vector<241x128xf32>
    %36 = arith.truncf %35 : vector<241x128xf32> to vector<241x128xbf16>
    %c5 = arith.constant 5 : index
    %c0_29 = arith.constant 0 : index
    %c0_30 = arith.constant 0 : index
    %37 = vector.load %arg2[%c5, %c0_29, %c0_30] : memref<9x128x128xbf16, #tpu.memory_space<vmem>>, vector<1x128x128xbf16>
    %38 = vector.shape_cast %37 : vector<1x128x128xbf16> to vector<128x128xbf16>
    %cst_31 = arith.constant dense<0.000000e+00> : vector<241x128xf32>
    %39 = tpu.matmul %36, %38, %cst_31 {dimension_numbers = #tpu.dot_dimension_numbers<[1], [0], [0], [1], [0, 0, 1, 1], [], []>} : vector<241x128xbf16>, vector<128x128xbf16>, vector<241x128xf32> -> vector<241x128xf32>
    %40 = arith.addf %33, %39 : vector<241x128xf32>
    %c0_32 = arith.constant 0 : index
    %c32 = arith.constant 32 : index
    %c0_33 = arith.constant 0 : index
    %41 = vector.load %arg1[%c0_32, %c32, %c0_33] : memref<1x288x128xf32, #tpu.memory_space<vmem>>, vector<1x241x128xf32>
    %42 = vector.shape_cast %41 : vector<1x241x128xf32> to vector<241x128xf32>
    %43 = arith.truncf %42 : vector<241x128xf32> to vector<241x128xbf16>
    %c6 = arith.constant 6 : index
    %c0_34 = arith.constant 0 : index
    %c0_35 = arith.constant 0 : index
    %44 = vector.load %arg2[%c6, %c0_34, %c0_35] : memref<9x128x128xbf16, #tpu.memory_space<vmem>>, vector<1x128x128xbf16>
    %45 = vector.shape_cast %44 : vector<1x128x128xbf16> to vector<128x128xbf16>
    %cst_36 = arith.constant dense<0.000000e+00> : vector<241x128xf32>
    %46 = tpu.matmul %43, %45, %cst_36 {dimension_numbers = #tpu.dot_dimension_numbers<[1], [0], [0], [1], [0, 0, 1, 1], [], []>} : vector<241x128xbf16>, vector<128x128xbf16>, vector<241x128xf32> -> vector<241x128xf32>
    %47 = arith.addf %40, %46 : vector<241x128xf32>
    %c0_37 = arith.constant 0 : index
    %c33 = arith.constant 33 : index
    %c0_38 = arith.constant 0 : index
    %48 = vector.load %arg1[%c0_37, %c33, %c0_38] : memref<1x288x128xf32, #tpu.memory_space<vmem>>, vector<1x241x128xf32>
    %49 = vector.shape_cast %48 : vector<1x241x128xf32> to vector<241x128xf32>
    %50 = arith.truncf %49 : vector<241x128xf32> to vector<241x128xbf16>
    %c7 = arith.constant 7 : index
    %c0_39 = arith.constant 0 : index
    %c0_40 = arith.constant 0 : index
    %51 = vector.load %arg2[%c7, %c0_39, %c0_40] : memref<9x128x128xbf16, #tpu.memory_space<vmem>>, vector<1x128x128xbf16>
    %52 = vector.shape_cast %51 : vector<1x128x128xbf16> to vector<128x128xbf16>
    %cst_41 = arith.constant dense<0.000000e+00> : vector<241x128xf32>
    %53 = tpu.matmul %50, %52, %cst_41 {dimension_numbers = #tpu.dot_dimension_numbers<[1], [0], [0], [1], [0, 0, 1, 1], [], []>} : vector<241x128xbf16>, vector<128x128xbf16>, vector<241x128xf32> -> vector<241x128xf32>
    %54 = arith.addf %47, %53 : vector<241x128xf32>
    %c0_42 = arith.constant 0 : index
    %c34 = arith.constant 34 : index
    %c0_43 = arith.constant 0 : index
    %55 = vector.load %arg1[%c0_42, %c34, %c0_43] : memref<1x288x128xf32, #tpu.memory_space<vmem>>, vector<1x241x128xf32>
    %56 = vector.shape_cast %55 : vector<1x241x128xf32> to vector<241x128xf32>
    %57 = arith.truncf %56 : vector<241x128xf32> to vector<241x128xbf16>
    %c8 = arith.constant 8 : index
    %c0_44 = arith.constant 0 : index
    %c0_45 = arith.constant 0 : index
    %58 = vector.load %arg2[%c8, %c0_44, %c0_45] : memref<9x128x128xbf16, #tpu.memory_space<vmem>>, vector<1x128x128xbf16>
    %59 = vector.shape_cast %58 : vector<1x128x128xbf16> to vector<128x128xbf16>
    %cst_46 = arith.constant dense<0.000000e+00> : vector<241x128xf32>
    %60 = tpu.matmul %57, %59, %cst_46 {dimension_numbers = #tpu.dot_dimension_numbers<[1], [0], [0], [1], [0, 0, 1, 1], [], []>} : vector<241x128xbf16>, vector<128x128xbf16>, vector<241x128xf32> -> vector<241x128xf32>
    %61 = arith.addf %54, %60 : vector<241x128xf32>
    %c0_47 = arith.constant 0 : index
    %c0_48 = arith.constant 0 : index
    %62 = vector.load %arg3[%c0_47, %c0_48] : memref<1x128xf32, #tpu.memory_space<vmem>>, vector<1x128xf32>
    %63 = vector.broadcast %62 : vector<1x128xf32> to vector<241x128xf32>
    %64 = arith.addf %61, %63 : vector<241x128xf32>
    %cst_49 = arith.constant 0.000000e+00 : f32
    %65 = vector.broadcast %cst_49 : f32 to vector<241x128xf32>
    %66 = arith.maximumf %64, %65 : vector<241x128xf32>
    %67 = vector.extract_strided_slice %66 {offsets = [0, 0], sizes = [240, 128], strides = [1, 1]} : vector<241x128xf32> to vector<240x128xf32>
    %68 = vector.extract_strided_slice %66 {offsets = [1, 0], sizes = [240, 128], strides = [1, 1]} : vector<241x128xf32> to vector<240x128xf32>
    %69 = arith.maximumf %67, %68 : vector<240x128xf32>
    %70 = vector.extract_strided_slice %69 {offsets = [0, 0], sizes = [224, 128], strides = [1, 1]} : vector<240x128xf32> to vector<224x128xf32>
    %71 = vector.extract_strided_slice %69 {offsets = [16, 0], sizes = [224, 128], strides = [1, 1]} : vector<240x128xf32> to vector<224x128xf32>
    %72 = arith.maximumf %70, %71 : vector<224x128xf32>
    %c0_50 = arith.constant 0 : index
    %c0_51 = arith.constant 0 : index
    %73 = vector.load %arg4[%c0_50, %c0_51] : memref<80x224xf32, #tpu.memory_space<vmem>>, vector<80x224xf32>
    %cst_52 = arith.constant dense<0.000000e+00> : vector<80x128xf32>
    %74 = tpu.matmul %73, %72, %cst_52 {dimension_numbers = #tpu.dot_dimension_numbers<[1], [0], [0], [1], [0, 0, 1, 1], [], []>} : vector<80x224xf32>, vector<224x128xf32>, vector<80x128xf32> -> vector<80x128xf32>
    %c0_53 = arith.constant 0 : index
    %c0_54 = arith.constant 0 : index
    %c0_55 = arith.constant 0 : index
    %75 = vector.load %arg5[%c0_53, %c0_54, %c0_55] : memref<1x80x128xf32, #tpu.memory_space<vmem>>, vector<1x80x128xf32>
    %76 = vector.shape_cast %75 : vector<1x80x128xf32> to vector<80x128xf32>
    %77 = vector.shape_cast %74 : vector<80x128xf32> to vector<1x80x128xf32>
    tpu.vector_store %arg5[%c0_53, %c0_54, %c0_55], %77 {strides = array<i32>} : memref<1x80x128xf32, #tpu.memory_space<vmem>>, vector<1x80x128xf32>,
    return
  }
  func.func @transform_0(%arg0: i32) -> (i32, i32, i32) {
    %c0_i32 = arith.constant 0 : i32
    %c0_i32_0 = arith.constant 0 : i32
    %c0_i32_1 = arith.constant 0 : i32
    return %arg0, %c0_i32, %c0_i32_0 : i32, i32, i32
  }
  func.func @transform_1(%arg0: i32) -> (i32, i32, i32) {
    %c0_i32 = arith.constant 0 : i32
    %c0_i32_0 = arith.constant 0 : i32
    %c0_i32_1 = arith.constant 0 : i32
    %c0_i32_2 = arith.constant 0 : i32
    return %c0_i32, %c0_i32_0, %c0_i32_1 : i32, i32, i32
  }
  func.func @transform_2(%arg0: i32) -> (i32, i32) {
    %c0_i32 = arith.constant 0 : i32
    %c0_i32_0 = arith.constant 0 : i32
    %c0_i32_1 = arith.constant 0 : i32
    return %c0_i32, %c0_i32_0 : i32, i32
  }
  func.func @transform_3(%arg0: i32) -> (i32, i32) {
    %c0_i32 = arith.constant 0 : i32
    %c0_i32_0 = arith.constant 0 : i32
    %c0_i32_1 = arith.constant 0 : i32
    return %c0_i32, %c0_i32_0 : i32, i32
  }
  func.func @transform_4(%arg0: i32) -> (i32, i32, i32) {
    %c0_i32 = arith.constant 0 : i32
    %c0_i32_0 = arith.constant 0 : i32
    %c0_i32_1 = arith.constant 0 : i32
    return %arg0, %c0_i32, %c0_i32_0 : i32, i32, i32
  }
}

</mosaic_0001>

<bundles_post_ra>
// kernel: tpu_custom_call.1
= control target key start
LH: loop header
LB: loop body
LE: loop exit
PB: predicated region body
PF: predicated region fallthrough
CT: control target
= control target key end

     0   :  { %9 = vsyncpa [#allocation3], 0  ;;  %s5581_s0 = inlined_call_operand.hbm [shape: f32[2,288,128], index: 0, kind: input, shape index: {}]   ;;  %s5582_s1 = inlined_call_operand.hbm [shape: bf16[9,128,128], index: 1, kind: input, shape index: {}]   ;;  %s5583_s2 = inlined_call_operand.vmem [shape: f32[1,128], index: 2, kind: input, shape index: {}]   ;;  %s5584_s3 = inlined_call_operand.hbm [shape: f32[80,224], index: 3, kind: input, shape index: {}]   ;;  %s5585_s4 = inlined_call_operand.hbm [shape: f32[2,80,128], index: 4, kind: output, shape index: {}]  }
   0x1   :  { %11 = vsyncpa [#allocation3 + $0x1], 0 }
   0x2   :  { %12 = vsyncpa [#allocation6], 0 }
   0x3   :  { %13 = vsyncpa [#allocation4], 0 }
   0x4   :  { %15 = vsyncpa [#allocation4 + $0x1], 0  ;;  %s4800_s15 = smov 0   ;;  %s4802_s16 = smov 0  }
   0x5   :  { %s4804_s17 = smov 0   ;;  %s4806_s18 = smov 0  }
   0x6 LB: > { %s4821_s19 = sadd.s32 4294967295, %s4760_s18   ;;  %s3442_s20 = sadd.s32 4294967294, %s4760_s18   ;;  %s4760_s18 = sphi %s4806_s18, %s5605_s18   ;;  %s4756_s17 = sphi %s4804_s17, %s5604_s17   ;;  %s4752_s16 = sphi %s4802_s16, %s5603_s16   ;;  %s4748_s15 = sphi %s4800_s15, %s5602_s15  }
   0x7   : > { %p41_p0 = scmp.ne.s32.totalorder %s4752_s16, %s4748_s15  ;;  %p5586_p1 = scmp.eq.s32.totalorder %s4821_s19, 0 }
   0x8   : > { %p134_p3 = scmp.eq.s32.totalorder %s3442_s20, 1  ;;  %p3443_p5 = scmp.ge.s32.totalorder %s4760_s18, 1 }
   0x9   : > { %p4830_p4 = por %p5586_p1, %p41_p0  ;;  %p141_p7 = scmp.lt.s32.totalorder %s4760_s18, 3 }
   0xa   : > { %p4835_p6 = por %p134_p3, %p41_p0  ;;  %s4762_s24 = smov [#allocation5]  }
   0xb   : > { %s5589_s21 = scalar_select %p4830_p4, 1, 0 }
   0xc   : > { %s5590_s22 = scalar_select %p4835_p6, 1, 0 }
   0xd   : > { %p4840_p8 = pnand %p3443_p5, %p141_p7  ;;  %s153_s25 = sshll.u32 %s4762_s24, 4  ;;  %s4844_s25 = int_to_ptr.vmem [resolvable:$true] %s153_s25 }
   0xe   : > { %s4763_s27 = smov [#allocation7]   ;;  %s4604_s5 = scalar_lea.hbm %s5582_s1, 9216 }
   0xf   : > { %p4468_p9 = pneg %p4840_p8  ;;  %s169_s28 = sshll.u32 %s4763_s27, 4  ;;  %s4855_s28 = int_to_ptr.vmem [resolvable:$true] %s169_s28 }
  0x10   : > { %p4605_p12 = scmp.ne.s32.totalorder %s5582_s1, %s4604_s5  ;;  %p4611_p5 = scmp.lt.u32.totalorder %s4604_s5, %s5582_s1 }
  0x11   : > { %p4851_p11 = pnand %p4468_p9, %p5586_p1 }
  0x13   : > { %p4606_p13 = pneg %p4851_p11 }
  0x15   : > { %p4607_p0 = pnand %p4606_p13, %p4605_p12 }
  0x17   : > { %p4608_p3 = pneg %p4607_p0 }
  0x19   : > { %p4613_p7 = pnand %p4611_p5, %p4608_p3 }
  0x1b   : > { %4616 = shalt.err (!%p4613_p7)
}
  0x1c   : > { %s4617_s10 = scalar_lea.vmem %s4844_s25, 9216  ;;  %p4625_p2 = scmp.lt.s32.totalorder %s4844_s25, %s4844_s25 }
  0x1d   : > { %p4618_p9 = scmp.ne.s32.totalorder %s4844_s25, %s4617_s10  ;;  %p4626_p12 = scmp.lt.s32.totalorder %s4617_s10, %s4617_s10 }
  0x1f   : > { %p4620_p10 = pnand %p4618_p9, %p4606_p13  ;;  %p4627_p0 = por %p4626_p12, %p4625_p2 }
  0x21   : > { %p4621_p1 = pneg %p4620_p10 }
  0x23   : > { %p4628_p6 = pnand %p4627_p0, %p4621_p1 }
  0x25   : > { %4631 = shalt.err (!%p4628_p6)
}
  0x26   : > { %s4764_s11 = smov 64   ;;  %s4765_s12 = smov 4  }
  0x27   : > { %4471 = dma.hbm_to_vmem [thread:$0]  (!%p4851_p11), %s5582_s1, 9216, %s4844_s25, [#allocation6], %s4764_s11, %s4764_s11, %s4765_s12  }
  0x28   : > { %s4632_s27 = scalar_lea.hbm %s5584_s3, 2560 }
  0x29   : > { %p4633_p2 = scmp.ne.s32.totalorder %s5584_s3, %s4632_s27  ;;  %p4639_p10 = scmp.lt.u32.totalorder %s4632_s27, %s5584_s3 }
  0x2b   : > { %p4635_p1 = pnand %p4633_p2, %p4606_p13 }
  0x2d   : > { %p4636_p6 = pneg %p4635_p1 }
  0x2f   : > { %p4641_p3 = pnand %p4639_p10, %p4636_p6 }
  0x31   : > { %4644 = shalt.err (!%p4641_p3)
}
  0x32   : > { %s4645_s25 = scalar_lea.vmem %s4855_s28, 2560  ;;  %p4653_p12 = scmp.lt.s32.totalorder %s4855_s28, %s4855_s28 }
  0x33   : > { %p4646_p5 = scmp.ne.s32.totalorder %s4855_s28, %s4645_s25  ;;  %p4654_p0 = scmp.lt.s32.totalorder %s4645_s25, %s4645_s25 }
  0x35   : > { %p4648_p7 = pnand %p4646_p5, %p4606_p13  ;;  %p4655_p2 = por %p4654_p0, %p4653_p12 }
  0x37   : > { %p4649_p9 = pneg %p4648_p7 }
  0x39   : > { %p4656_p1 = pnand %p4655_p2, %p4649_p9 }
  0x3b   : > { %4659 = shalt.err (!%p4656_p1)
}
  0x3c   : > { %s4766_s7 = smov 256   ;;  %s4767_s8 = smov 16  }
  0x3d   : > { %4474 = dma.hbm_to_vmem [thread:$0]  (!%p4851_p11), %s5584_s3, 2560, %s4855_s28, [#allocation6], %s4766_s7, %s4766_s7, %s4767_s8  }
  0x3e   : > { %s4910_s11 = sadd.s32 1, %s4760_s18   ;;  %s28_s13 = sadd.s32 1, %s4756_s17 }
  0x3f   : > { %s25_s12 = ssub.s32 %s4760_s18, %s4910_s11  ;;  %p35_p6 = scmp.ne.s32.totalorder %s4756_s17, %s4752_s16 }
  0x40   : > { %p26_p13 = scmp.eq.s32.totalorder %s25_s12, 0  ;;  %p36_p10 = scmp.eq.s32.totalorder %s4760_s18, 0 }
  0x41   : > { %p5593_p5 = scmp.eq.s32.totalorder %s4821_s19, 1  ;;  %p4485_p9 = scmp.lt.s32.totalorder %s4760_s18, 2 }
  0x42   : > { %s4919_s14 = scalar_select %p26_p13, %s4756_s17, %s28_s13  }
  0x43   : > { %p37_p3 = por %p36_p10, %p35_p6  ;;  %p4923_p7 = por %p5593_p5, %p35_p6 }
  0x44   : > { %s183_s26 = sand.u32 1, %s4756_s17   ;;  %s4452_s28 = smul.u32 4608, %s4760_s18 }
  0x45   : > { %s5594_s20 = scalar_select %p4923_p7, 1, 0 }
  0x46   : > { %s4451_s24 = smul.u32 288, %s183_s26  ;;  %p4930_p11 = pnand %p4485_p9, %p37_p3 }
  0x47   : > { %s4937_s5 = scalar_lea.hbm %s5581_s0, %s4452_s28  ;;  %s4941_s7 = scalar_lea.sflag [#allocation3], %s183_s26 }
  0x48   : > { %s187_s6 = scalar_lea.vmem [#allocation2], %s4451_s24  ;;  %s4660_s8 = scalar_lea.hbm %s4937_s5, 4608 }
  0x49   : > { %s194_s25 = sshll.u32 %s187_s6, 4  ;;  %p4661_p12 = scmp.ne.s32.totalorder %s4937_s5, %s4660_s8  ;;  %s4939_s25 = int_to_ptr.vmem [resolvable:$true] %s194_s25 }
  0x4a   : > { %p4662_p0 = pneg %p4930_p11  ;;  %s4665_s12 = scalar_lea.hbm %s5581_s0, 9216 }
  0x4b   : > { %p4666_p13 = scmp.lt.u32.totalorder %s4937_s5, %s5581_s0  ;;  %p4667_p6 = scmp.lt.u32.totalorder %s4665_s12, %s4660_s8 }
  0x4c   : > { %p4663_p2 = pnand %p4662_p0, %p4661_p12  ;;  %p4669_p3 = scmp.lt.u32.totalorder %s4660_s8, %s4937_s5 }
  0x4d   : > { %p4668_p10 = por %p4667_p6, %p4666_p13 }
  0x4e   : > { %p4664_p1 = pneg %p4663_p2 }
  0x4f   : > { %p4670_p5 = por %p4669_p3, %p4668_p10 }
  0x51   : > { %p4671_p9 = pnand %p4670_p5, %p4664_p1 }
  0x53   : > { %4674 = shalt.err (!%p4671_p9)
}
  0x54   : > { %s4675_s26 = scalar_lea.vmem %s4939_s25, 4608  ;;  %s4768_s24 = smov [#allocation2]  }
  0x55   : > { %p4676_p12 = scmp.ne.s32.totalorder %s4939_s25, %s4675_s26  ;;  %s4680_s29 = sshll.u32 %s4768_s24, 4  ;;  %s4681_s29 = int_to_ptr.vmem [resolvable:$false] %s4680_s29 }
  0x56   : > { %s4682_s30 = scalar_lea.vmem %s4681_s29, 9216  ;;  %p4683_p4 = scmp.lt.s32.totalorder %s4939_s25, %s4681_s29 }
  0x57   : > { %p4678_p2 = pnand %p4676_p12, %p4662_p0  ;;  %p4684_p13 = scmp.lt.s32.totalorder %s4682_s30, %s4675_s26 }
  0x59   : > { %p4679_p7 = pneg %p4678_p2  ;;  %p4685_p6 = por %p4684_p13, %p4683_p4 }
  0x5b   : > { %p4686_p10 = pnand %p4685_p6, %p4679_p7 }
  0x5d   : > { %4689 = shalt.err (!%p4686_p10)
}
  0x5e   : > { %s4769_s6 = smov 128   ;;  %s4770_s8 = smov 8  }
  0x5f   : > { %4478 = dma.hbm_to_vmem [thread:$0]  (!%p4930_p11), %s4937_s5, 4608, %s4939_s25, %s4941_s7, %s4769_s6, %s4769_s6, %s4770_s8  }
  0x60   : > { %206 = sbr.rel (%p4840_p8) target bundleno = 954 (0x3ba), region = 36  ;;  %s4972_s9 = sand.u32 (!%p4840_p8), 1, %s4752_s16  }
  0x61   : > { %s4453_s10 = smul.u32 (!%p4840_p8), 288, %s4972_s9  ;;  %s209_s12 = scalar_lea.sflag (!%p4840_p8), [#allocation3], %s4972_s9 }
  0x62   : > { %p5596_p4 = scmp.ne.s32.totalorder (!%p4840_p8), %s5589_s21, 0 }
  0x63   : > { %s4976_s13 = scalar_lea.vmem (!%p4840_p8), [#allocation2], %s4453_s10 }
  0x67   : > { %4735 = dma.done.wait (%p5596_p4), %s209_s12, 4608  }
  0x68   : > { %4737 = vsyncadd (%p5596_p4), %s209_s12, 4294962688  ;;  %p5597_p7 = scmp.eq.s32.totalorder %s4821_s19, 0 }
  0x6a   : > { %4739 = dma.done.wait (%p5597_p7), [#allocation6], 11776   ;;  %p5598_p8 = pmov %p5597_p7 }
  0x6b   : > { %v4532_v0 = vld [vmem:[#allocation5 + $0x40] sm:$0xff]   ;;  %v4534_v2 = vld [vmem:[#allocation5 + $0x48] sm:$0xff]   ;;  %v4536_v4 = vld [vmem:[#allocation5 + $0x50] sm:$0xff]   ;;  %vm3180_vm0 = vcmask 785408   ;;  %vm3010_vm1 = vcmask 1046528   ;;  %s4454_s27 = smul.u32 80, %s4972_s9 }
  0x6c   : > { %4741 = vsyncadd (%p5598_p8), [#allocation6], 4294955520  ;;  %v4533_v1 = vld [vmem:[#allocation5 + $0x100] sm:$0xff]   ;;  %3753 = vmatprep.subr.bf16.mxu1 %v4532_v0  ;;  %v4535_v3 = vld [vmem:[#allocation5 + $0x108] sm:$0xff]   ;;  %s4455_s7 = smul.u32 1280, %s4821_s19  ;;  %s3337_s29 = scalar_lea.sflag [#allocation4], %s4972_s9 }
  0x6d   : > { %3945 = vmatprep.subr.bf16.mxu0 %v4533_v1  ;;  %3754 = vmatpush3.bf16.msra.mxu1 %v4532_v0  ;;  %v4537_v5 = vld [vmem:[#allocation5 + $0x110] sm:$0xff]   ;;  %v4538_v6 = vld [vmem:[#allocation5 + $0x58] sm:$0xff]   ;;  %v4540_v8 = vld [vmem:[#allocation5 + $0x60] sm:$0xff]   ;;  %s5518_s5 = scalar_lea.vmem [#allocation8], %s4454_s27  ;;  %p5599_p0 = scmp.ne.s32.totalorder %s5594_s20, 0 }
  0x6e   : > { %3946 = vmatpush3.bf16.msra.mxu0 %v4533_v1  ;;  %3755 = vmatprep.subr.bf16.mxu1 %v4534_v2  ;;  %v4539_v7 = vld [vmem:[#allocation5 + $0x118] sm:$0xff]   ;;  %v4541_v9 = vld [vmem:[#allocation5 + $0x120] sm:$0xff]   ;;  %v4542_v10 = vld [vmem:[#allocation5 + $0x68] sm:$0xff]   ;;  %s3350_s25 = sshll.u32 %s5518_s5, 4  ;;  %s5536_s24 = scalar_lea.hbm %s5585_s4, %s4455_s7  ;;  %s5530_s25 = int_to_ptr.vmem [resolvable:$true] %s3350_s25 }
  0x6f   : > { %3947 = vmatprep.subr.bf16.mxu0 %v4535_v3  ;;  %v309_v11 = vld [vmem:[%s4976_s13 + $0x1] sm:$0xff]  ;;  %v310_v12 = vld [vmem:[%s4976_s13 + $0x9] sm:$0xff]  ;;  %v1395_v13 = vld [vmem:[%s4976_s13 + $0x11] sm:$0xff]  ;;  %s4690_s30 = scalar_lea.vmem %s5530_s25, 1280  ;;  %s4772_s19 = smov [#allocation8]  }
  0x70   : > { %v4543_v14 = vld [vmem:[#allocation5 + $0x128] sm:$0xff]   ;;  %v340_v15 = vpack.c.bf16 %v310_v12, %v309_v11  ;;  %v1396_v16 = vld [vmem:[%s4976_s13 + $0x19] sm:$0xff]  ;;  %v4544_v18 = vld [vmem:[#allocation5 + $0x70] sm:$0xff]   ;;  %p4691_p11 = scmp.ne.s32.totalorder %s5530_s25, %s4690_s30  ;;  %s4694_s6 = sshll.u32 %s4772_s19, 4  ;;  %s4695_s6 = int_to_ptr.vmem [resolvable:$false] %s4694_s6 }
  0x71   : > { %3756 = vmatpush3.bf16.msra.mxu1 %v4534_v2  ;;  %v1426_v17 = vpack.c.bf16 %v1396_v16, %v1395_v13  ;;  %v4545_v19 = vld [vmem:[#allocation5 + $0x130] sm:$0xff]   ;;  %v4546_v20 = vld [vmem:[#allocation5 + $0x78] sm:$0xff]   ;;  %v1397_v22 = vld [vmem:[%s4976_s13 + $0x21] sm:$0xff]  ;;  %s4696_s8 = scalar_lea.vmem %s4695_s6, 2560  ;;  %p4697_p5 = scmp.lt.s32.totalorder %s5530_s25, %s4695_s6 }
  0x72   : > { %3948 = vmatpush3.bf16.msra.mxu0 %v4535_v3  ;;  %3757 = vmatprep.subr.bf16.mxu1 %v4536_v4  ;;  %v4547_v21 = vld [vmem:[#allocation5 + $0x138] sm:$0xff]   ;;  %v1398_v23 = vld [vmem:[%s4976_s13 + $0x29] sm:$0xff]  ;;  %v4551_v24 = vld [vmem:[#allocation5] sm:$0xff]   ;;  %p4692_p1 = pnand %p4691_p11, %p5599_p0  ;;  %p4698_p9 = scmp.lt.s32.totalorder %s4696_s8, %s4690_s30 }
  0x73   : > { %3949 = vmatprep.subr.bf16.mxu0 %v4537_v5  ;;  %3769 = vmatprep.mubr.bf16.mxu1 %v340_v15  ;;  %v1399_v25 = vld [vmem:[%s4976_s13 + $0x31] sm:$0xff]  ;;  %v1400_v26 = vld [vmem:[%s4976_s13 + $0x39] sm:$0xff]  ;;  %v1427_v28 = vpack.c.bf16 %v1398_v23, %v1397_v22  ;;  %v4549_v30 = vld [vmem:[#allocation5 + $0x148] sm:$0xff]  }
  0x74   : > { %3961 = vmatprep.mubr.bf16.mxu0 %v1426_v17  ;;  %v4548_v27 = vld [vmem:[#allocation5 + $0x140] sm:$0xff]   ;;  %v1428_v29 = vpack.c.bf16 %v1400_v26, %v1399_v25  ;;  %v4553_v31 = vld [vmem:[#allocation5 + $0x8] sm:$0xff]   ;;  %v1403_v34 = vld [vmem:[%s4976_s13 + $0x51] sm:$0xff]  ;;  %p4693_p3 = pneg %p4692_p1  ;;  %p4699_p12 = por %p4698_p9, %p4697_p5 }
  0x75   : > { %3758 = vmatpush3.bf16.msra.mxu1 %v4536_v4  ;;  %v1401_v32 = vld [vmem:[%s4976_s13 + $0x41] sm:$0xff]  ;;  %v1402_v33 = vld [vmem:[%s4976_s13 + $0x49] sm:$0xff]  ;;  %v1404_v35 = vld [vmem:[%s4976_s13 + $0x59] sm:$0xff] }
  0x76   : > { %3950 = vmatpush3.bf16.msra.mxu0 %v4537_v5  ;;  %3759 = vmatprep.subr.bf16.mxu1 %v4538_v6  ;;  %v4550_v36 = vld [vmem:[#allocation5 + $0x150] sm:$0xff]   ;;  %v1429_v38 = vpack.c.bf16 %v1402_v33, %v1401_v32  ;;  %v1430_v39 = vpack.c.bf16 %v1404_v35, %v1403_v34  ;;  %v4552_v40 = vld [vmem:[#allocation5 + $0x158] sm:$0xff]   ;;  %v1405_v42 = vld [vmem:[%s4976_s13 + $0x61] sm:$0xff]  ;;  %p4700_p2 = pnand %p4699_p12, %p4693_p3 }
  0x77   : > { %3951 = vmatprep.subr.bf16.mxu0 %v4539_v7  ;;  %v4554_v37 = vld [vmem:[#allocation5 + $0x10] sm:$0xff]   ;;  %v4556_v41 = vld [vmem:[#allocation5 + $0x18] sm:$0xff]   ;;  %v4555_v46 = vld [vmem:[#allocation5 + $0x160] sm:$0xff]  }
  0x78   : > { %v1406_v43 = vld [vmem:[%s4976_s13 + $0x69] sm:$0xff]  ;;  %v1407_v44 = vld [vmem:[%s4976_s13 + $0x71] sm:$0xff]  ;;  %v1408_v45 = vld [vmem:[%s4976_s13 + $0x79] sm:$0xff] }
  0x79   : > { %3760 = vmatpush3.bf16.msra.mxu1 %v4538_v6  ;;  %v4557_v47 = vld [vmem:[#allocation5 + $0x20] sm:$0xff]   ;;  %v1431_v48 = vpack.c.bf16 %v1406_v43, %v1405_v42  ;;  %v1432_v49 = vpack.c.bf16 %v1408_v45, %v1407_v44  ;;  %v4558_v50 = vld [vmem:[#allocation5 + $0x168] sm:$0xff]   ;;  %v1411_v54 = vld [vmem:[%s4976_s13 + $0x91] sm:$0xff] }
  0x7a   : > { %3952 = vmatpush3.bf16.msra.mxu0 %v4539_v7  ;;  %3761 = vmatprep.subr.bf16.mxu1 %v4540_v8  ;;  %v4559_v51 = vld [vmem:[#allocation5 + $0x28] sm:$0xff]   ;;  %v1412_v55 = vld [vmem:[%s4976_s13 + $0x99] sm:$0xff]  ;;  %v4561_v56 = vld [vmem:[#allocation5 + $0x170] sm:$0xff]  }
  0x7b   : > { %3953 = vmatprep.subr.bf16.mxu0 %v4541_v9  ;;  %v1409_v52 = vld [vmem:[%s4976_s13 + $0x81] sm:$0xff]  ;;  %v1410_v53 = vld [vmem:[%s4976_s13 + $0x89] sm:$0xff]  ;;  %v1434_v59 = vpack.c.bf16 %v1412_v55, %v1411_v54  ;;  %v4563_v60 = vld [vmem:[#allocation5 + $0x178] sm:$0xff]  }
  0x7c   : > { %v4560_v57 = vld [vmem:[#allocation5 + $0x30] sm:$0xff]   ;;  %v1433_v58 = vpack.c.bf16 %v1410_v53, %v1409_v52  ;;  %v1413_v61 = vld [vmem:[%s4976_s13 + $0xa1] sm:$0xff]  ;;  %v4562_v62 = vld [vmem:[#allocation5 + $0x38] sm:$0xff]  }
  0x7d   : > { %3762 = vmatpush3.bf16.msra.mxu1 %v4540_v8  ;;  %v1414_v63 = vld [vmem:[%s4976_s13 + $0xa9] sm:$0xff]  ;;  %v1415_v0 = vld [vmem:[%s4976_s13 + $0xb1] sm:$0xff]  ;;  %v1416_v1 = vld [vmem:[%s4976_s13 + $0xb9] sm:$0xff] }
  0x7e   : > { %3954 = vmatpush3.bf16.msra.mxu0 %v4541_v9  ;;  %3763 = vmatprep.subr.bf16.mxu1 %v4542_v10  ;;  %v5010_v2 = vld [vmem:[#allocation5 + $0x180] sm:$0xff]   ;;  %v1435_v4 = vpack.c.bf16 %v1414_v63, %v1413_v61  ;;  %v1436_v5 = vpack.c.bf16 %v1416_v1, %v1415_v0  ;;  %v1418_v7 = vld [vmem:[%s4976_s13 + $0xc9] sm:$0xff]  ;;  %v1419_v8 = vld [vmem:[%s4976_s13 + $0xd1] sm:$0xff] }
  0x7f   : > { %3955 = vmatprep.subr.bf16.mxu0 %v4543_v14  ;;  %v5012_v3 = vld [vmem:[#allocation5 + $0x80] sm:$0xff]   ;;  %v1422_v13 = vld [vmem:[%s4976_s13 + $0xe9] sm:$0xff]  ;;  %v1698_v22 = vld [vmem:[%s4976_s13 + $0x12] sm:$0xff] }
  0x80   : > { %v1417_v6 = vld [vmem:[%s4976_s13 + $0xc1] sm:$0xff]  ;;  %v1420_v9 = vld [vmem:[%s4976_s13 + $0xd9] sm:$0xff]  ;;  %v1705_v44 = vld [vmem:[%s4976_s13 + $0x4a] sm:$0xff] }
  0x81   : > { %3764 = vmatpush3.bf16.msra.mxu1 %v4542_v10  ;;  %v1437_v10 = vpack.c.bf16 %v1418_v7, %v1417_v6  ;;  %v1438_v11 = vpack.c.bf16 %v1420_v9, %v1419_v8  ;;  %v1421_v12 = vld [vmem:[%s4976_s13 + $0xe1] sm:$0xff]  ;;  %v1424_v15 = vld [vmem:[%s4976_s13 + $0xf9] sm:$0xff]  ;;  %v1709_v61 = vld [vmem:[%s4976_s13 + $0x6a] sm:$0xff] }
  0x82   : > { %3956 = vmatpush3.bf16.msra.mxu0 %v4543_v14  ;;  %3765 = vmatprep.subr.bf16.mxu1 %v4544_v18  ;;  %v1423_v14 = vld [vmem:[%s4976_s13 + $0xf1] sm:$0xff]  ;;  %v1439_v16 = vpack.c.bf16 %v1422_v13, %v1421_v12  ;;  %v1699_v23 = vld [vmem:[%s4976_s13 + $0x1a] sm:$0xff]  ;;  %v251_v33 = vld [vmem:[%s4976_s13 + $0x28] sm:$0xff] }
  0x83   : > { %3957 = vmatprep.subr.bf16.mxu0 %v4545_v19  ;;  %v250_v32 = vld [vmem:[%s4976_s13 + $0x20] sm:$0xff]  ;;  %v1702_v34 = vld [vmem:[%s4976_s13 + $0x32] sm:$0xff]  ;;  %v4565_v42 = vld [vmem:[#allocation5 + $0x188] sm:$0xff]  }
  0x84   : > { %v1703_v35 = vld [vmem:[%s4976_s13 + $0x3a] sm:$0xff]  ;;  %v1704_v43 = vld [vmem:[%s4976_s13 + $0x42] sm:$0xff]  ;;  %v1710_v0 = vld [vmem:[%s4976_s13 + $0x72] sm:$0xff] }
  0x85   : > { %3766 = vmatpush3.bf16.msra.mxu1 %v4544_v18  ;;  %v339_v18 = vld [vmem:[%s4976_s13 + $0xf1] sm:$0x1]  ;;  %v254_v45 = vld [vmem:[%s4976_s13 + $0x40] sm:$0xff]  ;;  %v5065_v53 = vpack.c.bf16 %v1705_v44, %v1704_v43  ;;  %v259_v63 = vld [vmem:[%s4976_s13 + $0x68] sm:$0xff] }
  0x86   : > { %3958 = vmatpush3.bf16.msra.mxu0 %v4545_v19  ;;  %3767 = vmatprep.subr.bf16.mxu1 %v4546_v20  ;;  %v1425_v19 = vld [vmem:[%s4976_s13 + $0x101] sm:$0x1]  ;;  %v4574_v8 = vld [vmem:[#allocation5 + $0x1a8] sm:$0xff]  }
  0x87   : > { %3959 = vmatprep.subr.bf16.mxu0 %v4547_v21  ;;  %v1441_v25 = vpack.c.bf16 %v1425_v19, %v1425_v19  ;;  %v1711_v1 = vld [vmem:[%s4976_s13 + $0x7a] sm:$0xff]  ;;  %v4575_v9 = vld [vmem:[#allocation5 + $0xa8] sm:$0xff]  }
  0x88   : > { %v5089_v7 = vpack.c.bf16 %v1711_v1, %v1710_v0  ;;  %v1712_v12 = vld [vmem:[%s4976_s13 + $0x82] sm:$0xff]  ;;  %v1713_v13 = vld [vmem:[%s4976_s13 + $0x8a] sm:$0xff] }
  0x89   : > { %3768 = vmatpush3.bf16.msra.mxu1 %v4546_v20  ;;  %v246_v20 = vld [vmem:[%s4976_s13] sm:$0xff]  ;;  %v1725_v0 = vld [vmem:[%s4976_s13 + $0xea] sm:$0xff] }
  0x8a   : > { %3960 = vmatpush3.bf16.msra.mxu0 %v4547_v21  ;;  %3801 = vmatprep.subr.bf16.mxu1 %v4551_v24  ;;  %v247_v21 = vld [vmem:[%s4976_s13 + $0x8] sm:$0xff]  ;;  %v274_v1 = vld [vmem:[%s4976_s13 + $0xe0] sm:$0xff] }
  0x8b   : > { %3993 = vmatprep.subr.bf16.mxu0 %v4548_v27  ;;  %v277_v26 = vpack.c.bf16 %v247_v21, %v246_v20  ;;  %v4576_v20 = vld [vmem:[#allocation5 + $0xb0] sm:$0xff]   ;;  %v5105_v21 = vpack.c.bf16 %v1713_v13, %v1712_v12 }
  0x8c   : > { %3770 = vmatmul.mubr.bf16.vlgmr.msra.gmra.mrb[0].mxu1 %v1426_v17  ;;  %v1440_v17 = vpack.c.bf16 %v1424_v15, %v1423_v14  ;;  %v262_v14 = vld [vmem:[%s4976_s13 + $0x80] sm:$0xff]  ;;  %v263_v15 = vld [vmem:[%s4976_s13 + $0x88] sm:$0xff]  ;;  %v276_v13 = vld [vmem:[%s4976_s13 + $0xf0] sm:$0x1] }
  0x8d   : > { %3962 = vmatmul.mubr.bf16.vlgmr.msra.gmra.mrb[0].mxu0 %v1427_v28  ;;  %3773 = vmatprep.mubr.bf16.mxu1 %v1427_v28  ;;  %v248_v28 = vld [vmem:[%s4976_s13 + $0x10] sm:$0xff] }
  0x8e   : > { %3965 = vmatprep.mubr.bf16.mxu0 %v1428_v29  ;;  %3994 = vmatpush3.bf16.msra.mxu0 %v4548_v27  ;;  %v5030_v27 = vpack.c.bf16 %v1699_v23, %v1698_v22  ;;  %v5107_v22 = vpack.c.bf16 %v263_v15, %v262_v14  ;;  %v1728_v14 = vld [vmem:[%s4976_s13 + $0x102] sm:$0x1] }
  0x8f   : > { %3995 = vmatprep.subr.bf16.mxu0 %v4549_v30  ;;  %3802 = vmatpush3.bf16.msra.mxu1 %v4551_v24  ;;  %v355_v24 = vpack.c.bf16 %v339_v18, %v339_v18  ;;  %v4577_v18 = vld [vmem:[#allocation5 + $0x1b0] sm:$0xff]   ;;  %v789_v15 = vld [vmem:[%s4976_s13 + $0x2] sm:$0xff] }
  0x90   : > { %3803 = vmatprep.subr.bf16.mxu1 %v4553_v31 }
  0x92   : > { %3996 = vmatpush3.bf16.msra.mxu0 %v4549_v30  ;;  %v1700_v30 = vld [vmem:[%s4976_s13 + $0x22] sm:$0xff] }
  0x93   : > { %3997 = vmatprep.subr.bf16.mxu0 %v4550_v36  ;;  %3804 = vmatpush3.bf16.msra.mxu1 %v4553_v31  ;;  %v1701_v31 = vld [vmem:[%s4976_s13 + $0x2a] sm:$0xff] }
  0x94   : > { %3774 = vmatmul.mubr.bf16.gmra.mrb[4].mxu1 %v1428_v29  ;;  %3805 = vmatprep.subr.bf16.mxu1 %v4554_v37  ;;  %v249_v29 = vld [vmem:[%s4976_s13 + $0x18] sm:$0xff] }
  0x95   : > { %3966 = vmatmul.mubr.bf16.gmra.mrb[4].mxu0 %v1429_v38  ;;  %3777 = vmatprep.mubr.bf16.mxu1 %v1429_v38  ;;  %v5045_v38 = vpack.c.bf16 %v251_v33, %v250_v32  ;;  %v267_v32 = vld [vmem:[%s4976_s13 + $0xa8] sm:$0xff]  ;;  %v1718_v33 = vld [vmem:[%s4976_s13 + $0xb2] sm:$0xff] }
  0x96   : > { %3969 = vmatprep.mubr.bf16.mxu0 %v1430_v39  ;;  %3998 = vmatpush3.bf16.msra.mxu0 %v4550_v36  ;;  %v5041_v36 = vpack.c.bf16 %v249_v29, %v248_v28  ;;  %v265_v28 = vld [vmem:[%s4976_s13 + $0x98] sm:$0xff]  ;;  %v1716_v29 = vld [vmem:[%s4976_s13 + $0xa2] sm:$0xff] }
  0x97   : > { %3999 = vmatprep.subr.bf16.mxu0 %v4552_v40  ;;  %3806 = vmatpush3.bf16.msra.mxu1 %v4554_v37  ;;  %v5043_v37 = vpack.c.bf16 %v1701_v31, %v1700_v30  ;;  %v1717_v30 = vld [vmem:[%s4976_s13 + $0xaa] sm:$0xff]  ;;  %v266_v31 = vld [vmem:[%s4976_s13 + $0xa0] sm:$0xff] }
  0x98   : > { %3807 = vmatprep.subr.bf16.mxu1 %v4556_v41  ;;  %v5131_v43 = vpack.c.bf16 %v267_v32, %v266_v31  ;;  %v4590_v31 = vld [vmem:[#allocation5 + $0x1e8] sm:$0xff]   ;;  %v4592_v32 = vld [vmem:[#allocation5 + $0xf0] sm:$0xff]  }
  0x9a   : > { %4000 = vmatpush3.bf16.msra.mxu0 %v4552_v40  ;;  %v252_v40 = vld [vmem:[%s4976_s13 + $0x30] sm:$0xff] }
  0x9b   : > { %4001 = vmatprep.subr.bf16.mxu0 %v4555_v46  ;;  %3808 = vmatpush3.bf16.msra.mxu1 %v4556_v41  ;;  %v253_v41 = vld [vmem:[%s4976_s13 + $0x38] sm:$0xff] }
  0x9c   : > { %3778 = vmatmul.mubr.bf16.gmra.mrb[8].mxu1 %v1430_v39  ;;  %3809 = vmatprep.subr.bf16.mxu1 %v4557_v47  ;;  %v5047_v39 = vpack.c.bf16 %v1703_v35, %v1702_v34  ;;  %v5063_v52 = vpack.c.bf16 %v253_v41, %v252_v40  ;;  %v1719_v34 = vld [vmem:[%s4976_s13 + $0xba] sm:$0xff] }
  0x9d   : > { %3970 = vmatmul.mubr.bf16.gmra.mrb[8].mxu0 %v1431_v48  ;;  %3781 = vmatprep.mubr.bf16.mxu1 %v1431_v48  ;;  %v1706_v48 = vld [vmem:[%s4976_s13 + $0x52] sm:$0xff]  ;;  %v5123_v35 = vld [vmem:[#allocation5 + $0x1c0] sm:$0xff]   ;;  %v5133_v44 = vpack.c.bf16 %v1719_v34, %v1718_v33  ;;  %v2030_v34 = vld [vmem:[%s4976_s13 + $0x108] sm:$0xff] }
  0x9e   : > { %3973 = vmatprep.mubr.bf16.mxu0 %v1432_v49  ;;  %4002 = vmatpush3.bf16.msra.mxu0 %v4555_v46  ;;  %v4569_v46 = vld [vmem:[#allocation5 + $0x88] sm:$0xff]   ;;  %v5127_v41 = vld [vmem:[#allocation5 + $0xc0] sm:$0xff]   ;;  %v4595_v33 = vld [vmem:[#allocation5 + $0x1f8] sm:$0xff]  }
  0x9f   : > { %4003 = vmatprep.subr.bf16.mxu0 %v4558_v50  ;;  %3810 = vmatpush3.bf16.msra.mxu1 %v4557_v47  ;;  %v255_v47 = vld [vmem:[%s4976_s13 + $0x48] sm:$0xff] }
  0xa0   : > { %3811 = vmatprep.subr.bf16.mxu1 %v4559_v51  ;;  %v5067_v54 = vpack.c.bf16 %v255_v47, %v254_v45  ;;  %v268_v45 = vld [vmem:[%s4976_s13 + $0xb0] sm:$0xff]  ;;  %v1720_v47 = vld [vmem:[%s4976_s13 + $0xc2] sm:$0xff] }
  0xa2   : > { %4004 = vmatpush3.bf16.msra.mxu0 %v4558_v50  ;;  %v4566_v50 = vld [vmem:[#allocation5 + $0x190] sm:$0xff]  }
  0xa3   : > { %3812 = vmatpush3.bf16.msra.mxu1 %v4559_v51  ;;  %4005 = vmatprep.subr.bf16.mxu0 %v4561_v56  ;;  %v4570_v51 = vld [vmem:[#allocation5 + $0x90] sm:$0xff]  }
  0xa4   : > { %3782 = vmatmul.mubr.bf16.gmra.mrb[12].mxu1 %v1432_v49  ;;  %3813 = vmatprep.subr.bf16.mxu1 %v4560_v57  ;;  %v1707_v49 = vld [vmem:[%s4976_s13 + $0x5a] sm:$0xff] }
  0xa5   : > { %3974 = vmatmul.mubr.bf16.gmra.mrb[12].mxu0 %v1433_v58  ;;  %3785 = vmatprep.mubr.bf16.mxu1 %v1433_v58  ;;  %v5069_v55 = vpack.c.bf16 %v1707_v49, %v1706_v48  ;;  %v256_v58 = vld [vmem:[%s4976_s13 + $0x50] sm:$0xff]  ;;  %v270_v49 = vld [vmem:[%s4976_s13 + $0xc0] sm:$0xff] }
  0xa6   : > { %3977 = vmatprep.mubr.bf16.mxu0 %v1434_v59  ;;  %4006 = vmatpush3.bf16.msra.mxu0 %v4561_v56  ;;  %v4568_v56 = vld [vmem:[#allocation5 + $0x198] sm:$0xff]   ;;  %v1721_v48 = vld [vmem:[%s4976_s13 + $0xca] sm:$0xff] }
  0xa7   : > { %3814 = vmatpush3.bf16.msra.mxu1 %v4560_v57  ;;  %4007 = vmatprep.subr.bf16.mxu0 %v4563_v60  ;;  %v4572_v57 = vld [vmem:[#allocation5 + $0x98] sm:$0xff]  }
  0xa8   : > { %3815 = vmatprep.subr.bf16.mxu1 %v4562_v62 }
  0xaa   : > { %4008 = vmatpush3.bf16.msra.mxu0 %v4563_v60  ;;  %v1708_v60 = vld [vmem:[%s4976_s13 + $0x62] sm:$0xff] }
  0xab   : > { %3816 = vmatpush3.bf16.msra.mxu1 %v4562_v62  ;;  %4041 = vmatprep.subr.bf16.mxu0 %v5010_v2  ;;  %v258_v62 = vld [vmem:[%s4976_s13 + $0x60] sm:$0xff] }
  0xac   : > { %3786 = vmatmul.mubr.bf16.gmra.mrb[16].mxu1 %v1434_v59  ;;  %3849 = vmatprep.subr.bf16.mxu1 %v5012_v3  ;;  %v257_v59 = vld [vmem:[%s4976_s13 + $0x58] sm:$0xff]  ;;  %v5087_v6 = vpack.c.bf16 %v259_v63, %v258_v62  ;;  %v1724_v63 = vld [vmem:[%s4976_s13 + $0xe2] sm:$0xff] }
  0xad   : > { %3978 = vmatmul.mubr.bf16.gmra.mrb[16].mxu0 %v1435_v4  ;;  %3789 = vmatprep.mubr.bf16.mxu1 %v1435_v4  ;;  %v4573_v4 = vld [vmem:[#allocation5 + $0xa0] sm:$0xff]   ;;  %v273_v62 = vld [vmem:[%s4976_s13 + $0xd8] sm:$0xff] }
  0xae   : > { %3981 = vmatprep.mubr.bf16.mxu0 %v1436_v5 }
  0xb4   : > { %3790 = vmatmul.mubr.bf16.gmra.mrb[20].mxu1 %v1436_v5  ;;  %v5085_v5 = vpack.c.bf16 %v1709_v61, %v1708_v60  ;;  %v272_v61 = vld [vmem:[%s4976_s13 + $0xd0] sm:$0xff] }
  0xb5   : > { %3982 = vmatmul.mubr.bf16.gmra.mrb[20].mxu0 %v1437_v10  ;;  %3793 = vmatprep.mubr.bf16.mxu1 %v1437_v10  ;;  %v260_v10 = vld [vmem:[%s4976_s13 + $0x70] sm:$0xff] }
  0xb6   : > { %3985 = vmatprep.mubr.bf16.mxu0 %v1438_v11 }
  0xbc   : > { %3794 = vmatmul.mubr.bf16.gmra.mrb[24].mxu1 %v1438_v11  ;;  %v261_v11 = vld [vmem:[%s4976_s13 + $0x78] sm:$0xff] }
  0xbd   : > { %3986 = vmatmul.mubr.bf16.gmra.mrb[24].mxu0 %v1439_v16  ;;  %3797 = vmatprep.mubr.bf16.mxu1 %v1439_v16  ;;  %v1714_v16 = vld [vmem:[%s4976_s13 + $0x92] sm:$0xff]  ;;  %v5103_v19 = vpack.c.bf16 %v261_v11, %v260_v10  ;;  %v5171_v10 = vpack.c.bf16 %v1725_v0, %v1724_v63 }
  0xbe   : > { %3989 = vmatprep.mubr.bf16.mxu0 %v1440_v17  ;;  %v1715_v17 = vld [vmem:[%s4976_s13 + $0x9a] sm:$0xff] }
  0xbf   : > { %v5109_v23 = vpack.c.bf16 %v1715_v17, %v1714_v16  ;;  %v790_v16 = vld [vmem:[%s4976_s13 + $0xa] sm:$0xff]  ;;  %v292_v17 = vpack.c.bf16 %v276_v13, %v276_v13 }
  0xc0   : > { %v4598_v13 = vld [vmem:[#allocation5 + $0x210] sm:$0xff]  }
  0xc4   : > { %3798 = vmatmul.mubr.bf16.gmra.mrb[28].mxu1 %v355_v24  ;;  %v4579_v24 = vld [vmem:[#allocation5 + $0x1b8] sm:$0xff]  }
  0xc5   : > { %3990 = vmatmul.mubr.bf16.gmra.mrb[28].mxu0 %v1441_v25  ;;  %3817 = vmatprep.mubr.bf16.mxu1 %v277_v26  ;;  %v4578_v25 = vld [vmem:[#allocation5 + $0xb8] sm:$0xff]   ;;  %v264_v26 = vld [vmem:[%s4976_s13 + $0x90] sm:$0xff] }
  0xc6   : > { %4009 = vmatprep.mubr.bf16.mxu0 %v5030_v27  ;;  %v5125_v40 = vpack.c.bf16 %v265_v28, %v264_v26  ;;  %v4582_v26 = vld [vmem:[#allocation5 + $0x1d0] sm:$0xff]  }
  0xc7   : > { %v4586_v28 = vld [vmem:[#allocation5 + $0xd0] sm:$0xff]  }
  0xcc   : > { %3818 = vmatmul.mubr.bf16.vlgmr.msra.gmra.mrb[0].mxu1 %v5041_v36 }
  0xcd   : > { %4010 = vmatmul.mubr.bf16.vlgmr.msra.gmra.mrb[0].mxu0 %v5043_v37  ;;  %3821 = vmatprep.mubr.bf16.mxu1 %v5045_v38 }
  0xce   : > { %4013 = vmatprep.mubr.bf16.mxu0 %v5047_v39  ;;  %4042 = vmatpush3.bf16.msra.mxu0 %v5010_v2  ;;  %v4571_v2 = vld [vmem:[#allocation5 + $0x1a0] sm:$0xff]  }
  0xcf   : > { %4043 = vmatprep.subr.bf16.mxu0 %v4565_v42  ;;  %3850 = vmatpush3.bf16.msra.mxu1 %v5012_v3  ;;  %v5083_v3 = vpack.c.bf16 %v257_v59, %v256_v58  ;;  %v5151_v58 = vpack.c.bf16 %v1721_v48, %v1720_v47  ;;  %v2305_v47 = vld [vmem:[%s4976_s13 + $0x29] sm:$0xff] }
  0xd0   : > { %3851 = vmatprep.subr.bf16.mxu1 %v4569_v46 }
  0xd2   : > { %4044 = vmatpush3.bf16.msra.mxu0 %v4565_v42  ;;  %v5129_v42 = vpack.c.bf16 %v1717_v30, %v1716_v29  ;;  %v4584_v29 = vld [vmem:[#allocation5 + $0x1d8] sm:$0xff]   ;;  %v4589_v30 = vld [vmem:[#allocation5 + $0xe0] sm:$0xff]  }
  0xd3   : > { %4045 = vmatprep.subr.bf16.mxu0 %v4566_v50  ;;  %3852 = vmatpush3.bf16.msra.mxu1 %v4569_v46  ;;  %v269_v46 = vld [vmem:[%s4976_s13 + $0xb8] sm:$0xff] }
  0xd4   : > { %3822 = vmatmul.mubr.bf16.gmra.mrb[4].mxu1 %v5063_v52  ;;  %3853 = vmatprep.subr.bf16.mxu1 %v4570_v51 }
  0xd5   : > { %4014 = vmatmul.mubr.bf16.gmra.mrb[4].mxu0 %v5065_v53  ;;  %3825 = vmatprep.mubr.bf16.mxu1 %v5067_v54 }
  0xd6   : > { %4017 = vmatprep.mubr.bf16.mxu0 %v5069_v55  ;;  %4046 = vmatpush3.bf16.msra.mxu0 %v4566_v50  ;;  %v271_v50 = vld [vmem:[%s4976_s13 + $0xc8] sm:$0xff] }
  0xd7   : > { %4047 = vmatprep.subr.bf16.mxu0 %v4568_v56  ;;  %3854 = vmatpush3.bf16.msra.mxu1 %v4570_v51  ;;  %v1722_v51 = vld [vmem:[%s4976_s13 + $0xd2] sm:$0xff]  ;;  %v5153_v59 = vpack.c.bf16 %v271_v50, %v270_v49 }
  0xd8   : > { %3855 = vmatprep.subr.bf16.mxu1 %v4572_v57 }
  0xda   : > { %4048 = vmatpush3.bf16.msra.mxu0 %v4568_v56  ;;  %v1723_v56 = vld [vmem:[%s4976_s13 + $0xda] sm:$0xff] }
  0xdb   : > { %4049 = vmatprep.subr.bf16.mxu0 %v4571_v2  ;;  %3856 = vmatpush3.bf16.msra.mxu1 %v4572_v57  ;;  %v5149_v57 = vpack.c.bf16 %v269_v46, %v268_v45  ;;  %v5155_v60 = vpack.c.bf16 %v1723_v56, %v1722_v51  ;;  %v2031_v45 = vld [vmem:[%s4976_s13 + $0x110] sm:$0x1]  ;;  %v2304_v46 = vld [vmem:[%s4976_s13 + $0x21] sm:$0xff]  ;;  %v2306_v51 = vld [vmem:[%s4976_s13 + $0x31] sm:$0xff] }
  0xdc   : > { %3826 = vmatmul.mubr.bf16.gmra.mrb[8].mxu1 %v5083_v3  ;;  %3857 = vmatprep.subr.bf16.mxu1 %v4573_v4  ;;  %v2047_v49 = vpack.c.bf16 %v2031_v45, %v2031_v45  ;;  %v2335_v50 = vpack.c.bf16 %v2305_v47, %v2304_v46  ;;  %v2307_v56 = vld [vmem:[%s4976_s13 + $0x39] sm:$0xff]  ;;  %v2334_v45 = vld [vmem:[%s4976_s13 + $0x111] sm:$0x1] }
  0xdd   : > { %4018 = vmatmul.mubr.bf16.gmra.mrb[8].mxu0 %v5085_v5  ;;  %3829 = vmatprep.mubr.bf16.mxu1 %v5087_v6  ;;  %v2336_v63 = vpack.c.bf16 %v2307_v56, %v2306_v51  ;;  %v2608_v46 = vld [vmem:[%s4976_s13 + $0x2a] sm:$0xff] }
  0xde   : > { %4021 = vmatprep.mubr.bf16.mxu0 %v5089_v7  ;;  %4050 = vmatpush3.bf16.msra.mxu0 %v4571_v2  ;;  %v275_v2 = vld [vmem:[%s4976_s13 + $0xe8] sm:$0xff] }
  0xdf   : > { %4051 = vmatprep.subr.bf16.mxu0 %v4574_v8  ;;  %3858 = vmatpush3.bf16.msra.mxu1 %v4573_v4  ;;  %v1726_v4 = vld [vmem:[%s4976_s13 + $0xf2] sm:$0xff]  ;;  %v5173_v11 = vpack.c.bf16 %v275_v2, %v274_v1  ;;  %v4597_v1 = vld [vmem:[#allocation5 + $0x208] sm:$0xff]  }
  0xe0   : > { %3859 = vmatprep.subr.bf16.mxu1 %v4575_v9  ;;  %v2310_v2 = vld [vmem:[%s4976_s13 + $0x51] sm:$0xff] }
  0xe1   : > { %v2612_v51 = vld [vmem:[%s4976_s13 + $0x4a] sm:$0xff] }
  0xe2   : > { %4052 = vmatpush3.bf16.msra.mxu0 %v4574_v8  ;;  %v1727_v8 = vld [vmem:[%s4976_s13 + $0xfa] sm:$0xff] }
  0xe3   : > { %3860 = vmatpush3.bf16.msra.mxu1 %v4575_v9  ;;  %4053 = vmatprep.subr.bf16.mxu0 %v4577_v18  ;;  %v5169_v9 = vpack.c.bf16 %v273_v62, %v272_v61  ;;  %v5175_v12 = vpack.c.bf16 %v1727_v8, %v1726_v4  ;;  %v2308_v61 = vld [vmem:[%s4976_s13 + $0x41] sm:$0xff]  ;;  %v2309_v62 = vld [vmem:[%s4976_s13 + $0x49] sm:$0xff]  ;;  %v2311_v4 = vld [vmem:[%s4976_s13 + $0x59] sm:$0xff] }
  0xe4   : > { %3830 = vmatmul.mubr.bf16.gmra.mrb[12].mxu1 %v5103_v19  ;;  %3861 = vmatprep.subr.bf16.mxu1 %v4576_v20  ;;  %v2337_v0 = vpack.c.bf16 %v2309_v62, %v2308_v61  ;;  %v2313_v8 = vld [vmem:[%s4976_s13 + $0x69] sm:$0xff]  ;;  %v2613_v62 = vld [vmem:[%s4976_s13 + $0x52] sm:$0xff] }
  0xe5   : > { %4022 = vmatmul.mubr.bf16.gmra.mrb[12].mxu0 %v5105_v21  ;;  %3833 = vmatprep.mubr.bf16.mxu1 %v5107_v22 }
  0xe6   : > { %4025 = vmatprep.mubr.bf16.mxu0 %v5109_v23  ;;  %4054 = vmatpush3.bf16.msra.mxu0 %v4577_v18  ;;  %v1744_v18 = vpack.c.bf16 %v1728_v14, %v1728_v14  ;;  %v2338_v14 = vpack.c.bf16 %v2311_v4, %v2310_v2 }
  0xe7   : > { %3862 = vmatpush3.bf16.msra.mxu1 %v4576_v20  ;;  %4055 = vmatprep.subr.bf16.mxu0 %v4579_v24  ;;  %v820_v20 = vpack.c.bf16 %v790_v16, %v789_v15  ;;  %v2315_v16 = vld [vmem:[%s4976_s13 + $0x79] sm:$0xff] }
  0xe8   : > { %3863 = vmatprep.subr.bf16.mxu1 %v4578_v25 }
  0xea   : > { %4056 = vmatpush3.bf16.msra.mxu0 %v4579_v24  ;;  %v4581_v24 = vld [vmem:[#allocation5 + $0x1c8] sm:$0xff]  }
  0xeb   : > { %3864 = vmatpush3.bf16.msra.mxu1 %v4578_v25  ;;  %4089 = vmatprep.subr.bf16.mxu0 %v5123_v35  ;;  %v4585_v25 = vld [vmem:[#allocation5 + $0xc8] sm:$0xff]  }
  0xec   : > { %3834 = vmatmul.mubr.bf16.gmra.mrb[16].mxu1 %v5125_v40  ;;  %3897 = vmatprep.subr.bf16.mxu1 %v5127_v41 }
  0xed   : > { %4026 = vmatmul.mubr.bf16.gmra.mrb[16].mxu0 %v5129_v42  ;;  %3837 = vmatprep.mubr.bf16.mxu1 %v5131_v43 }
  0xee   : > { %4029 = vmatprep.mubr.bf16.mxu0 %v5133_v44 }
  0xf4   : > { %3838 = vmatmul.mubr.bf16.gmra.mrb[20].mxu1 %v5149_v57 }
  0xf5   : > { %4030 = vmatmul.mubr.bf16.gmra.mrb[20].mxu0 %v5151_v58  ;;  %3841 = vmatprep.mubr.bf16.mxu1 %v5153_v59 }
  0xf6   : > { %4033 = vmatprep.mubr.bf16.mxu0 %v5155_v60 }
  0xfc   : > { %3842 = vmatmul.mubr.bf16.gmra.mrb[24].mxu1 %v5169_v9 }
  0xfd   : > { %4034 = vmatmul.mubr.bf16.gmra.mrb[24].mxu0 %v5171_v10  ;;  %3845 = vmatprep.mubr.bf16.mxu1 %v5173_v11 }
  0xfe   : > { %4037 = vmatprep.mubr.bf16.mxu0 %v5175_v12 }
 0x104   : > { %3846 = vmatmul.mubr.bf16.gmra.mrb[32].mxu1 %v292_v17  ;;  %v2316_v17 = vld [vmem:[%s4976_s13 + $0x81] sm:$0xff] }
 0x105   : > { %4038 = vmatmul.mubr.bf16.gmra.mrb[32].mxu0 %v1744_v18  ;;  %3865 = vmatprep.mubr.bf16.mxu1 %v820_v20  ;;  %v2317_v18 = vld [vmem:[%s4976_s13 + $0x89] sm:$0xff]  ;;  %v4600_v20 = vld [vmem:[#allocation5 + $0x220] sm:$0xff]  }
 0x106   : > { %4057 = vmatprep.mubr.bf16.mxu0 %v5045_v38 }
 0x10c   : > { %3866 = vmatmul.mubr.bf16.vlgmr.msra.gmra.mrb[0].mxu1 %v5030_v27  ;;  %v4588_v27 = vld [vmem:[#allocation5 + $0xd8] sm:$0xff]  }
 0x10d   : > { %4058 = vmatmul.mubr.bf16.vlgmr.msra.gmra.mrb[0].mxu0 %v5063_v52  ;;  %3869 = vmatprep.mubr.bf16.mxu1 %v5043_v37  ;;  %v4587_v37 = vld [vmem:[#allocation5 + $0x1e0] sm:$0xff]  }
 0x10e   : > { %4061 = vmatprep.mubr.bf16.mxu0 %v5067_v54  ;;  %4090 = vmatpush3.bf16.msra.mxu0 %v5123_v35 }
 0x10f   : > { %4091 = vmatprep.subr.bf16.mxu0 %v4581_v24  ;;  %3898 = vmatpush3.bf16.msra.mxu1 %v5127_v41 }
 0x110   : > { %3899 = vmatprep.subr.bf16.mxu1 %v4585_v25 }
 0x112   : > { %4092 = vmatpush3.bf16.msra.mxu0 %v4581_v24 }
 0x113   : > { %4093 = vmatprep.subr.bf16.mxu0 %v4582_v26  ;;  %3900 = vmatpush3.bf16.msra.mxu1 %v4585_v25  ;;  %v2341_v25 = vpack.c.bf16 %v2317_v18, %v2316_v17 }
 0x114   : > { %3870 = vmatmul.mubr.bf16.gmra.mrb[4].mxu1 %v5047_v39  ;;  %3901 = vmatprep.subr.bf16.mxu1 %v4586_v28  ;;  %v4591_v39 = vld [vmem:[#allocation5 + $0xe8] sm:$0xff]  }
 0x115   : > { %4062 = vmatmul.mubr.bf16.gmra.mrb[4].mxu0 %v5083_v3  ;;  %3873 = vmatprep.mubr.bf16.mxu1 %v5065_v53  ;;  %v4593_v53 = vld [vmem:[#allocation5 + $0x1f0] sm:$0xff]  }
 0x116   : > { %4065 = vmatprep.mubr.bf16.mxu0 %v5087_v6  ;;  %4094 = vmatpush3.bf16.msra.mxu0 %v4582_v26  ;;  %v2319_v26 = vld [vmem:[%s4976_s13 + $0x99] sm:$0xff] }
 0x117   : > { %4095 = vmatprep.subr.bf16.mxu0 %v4584_v29  ;;  %3902 = vmatpush3.bf16.msra.mxu1 %v4586_v28  ;;  %v2320_v28 = vld [vmem:[%s4976_s13 + $0xa1] sm:$0xff] }
 0x118   : > { %3903 = vmatprep.subr.bf16.mxu1 %v4588_v27 }
 0x11a   : > { %4096 = vmatpush3.bf16.msra.mxu0 %v4584_v29  ;;  %v2321_v29 = vld [vmem:[%s4976_s13 + $0xa9] sm:$0xff] }
 0x11b   : > { %4097 = vmatprep.subr.bf16.mxu0 %v4587_v37  ;;  %3904 = vmatpush3.bf16.msra.mxu1 %v4588_v27  ;;  %v4602_v27 = vld [vmem:[#allocation5 + $0x230] sm:$0xff]  }
 0x11c   : > { %3874 = vmatmul.mubr.bf16.gmra.mrb[8].mxu1 %v5069_v55  ;;  %3905 = vmatprep.subr.bf16.mxu1 %v4589_v30  ;;  %v4594_v55 = vld [vmem:[#allocation5 + $0xf8] sm:$0xff]  }
 0x11d   : > { %4066 = vmatmul.mubr.bf16.gmra.mrb[8].mxu0 %v5103_v19  ;;  %3877 = vmatprep.mubr.bf16.mxu1 %v5085_v5  ;;  %v4596_v5 = vld [vmem:[#allocation5 + $0x200] sm:$0xff]  }
 0x11e   : > { %4069 = vmatprep.mubr.bf16.mxu0 %v5107_v22  ;;  %4098 = vmatpush3.bf16.msra.mxu0 %v4587_v37 }
 0x11f   : > { %4099 = vmatprep.subr.bf16.mxu0 %v4590_v31  ;;  %3906 = vmatpush3.bf16.msra.mxu1 %v4589_v30  ;;  %v2343_v30 = vpack.c.bf16 %v2321_v29, %v2320_v28  ;;  %v2623_v28 = vld [vmem:[%s4976_s13 + $0xa2] sm:$0xff]  ;;  %v2624_v29 = vld [vmem:[%s4976_s13 + $0xaa] sm:$0xff] }
 0x120   : > { %3907 = vmatprep.subr.bf16.mxu1 %v4591_v39 }
 0x122   : > { %4100 = vmatpush3.bf16.msra.mxu0 %v4590_v31  ;;  %v2323_v31 = vld [vmem:[%s4976_s13 + $0xb9] sm:$0xff] }
 0x123   : > { %3908 = vmatpush3.bf16.msra.mxu1 %v4591_v39  ;;  %4101 = vmatprep.subr.bf16.mxu0 %v4593_v53  ;;  %v2324_v39 = vld [vmem:[%s4976_s13 + $0xc1] sm:$0xff] }
 0x124   : > { %3878 = vmatmul.mubr.bf16.gmra.mrb[12].mxu1 %v5089_v7  ;;  %3909 = vmatprep.subr.bf16.mxu1 %v4592_v32  ;;  %v2027_v7 = vld [vmem:[%s4976_s13 + $0xf0] sm:$0xff] }
 0x125   : > { %4070 = vmatmul.mubr.bf16.gmra.mrb[12].mxu0 %v5125_v40  ;;  %3881 = vmatprep.mubr.bf16.mxu1 %v5105_v21  ;;  %v2028_v21 = vld [vmem:[%s4976_s13 + $0xf8] sm:$0xff] }
 0x126   : > { %4073 = vmatprep.mubr.bf16.mxu0 %v5131_v43  ;;  %4102 = vmatpush3.bf16.msra.mxu0 %v4593_v53  ;;  %v5216_v35 = vpack.c.bf16 %v2028_v21, %v2027_v7  ;;  %v2325_v53 = vld [vmem:[%s4976_s13 + $0xc9] sm:$0xff] }
 0x127   : > { %3910 = vmatpush3.bf16.msra.mxu1 %v4592_v32  ;;  %4103 = vmatprep.subr.bf16.mxu0 %v4595_v33 }
 0x128   : > { %3911 = vmatprep.subr.bf16.mxu1 %v4594_v55 }
 0x12a   : > { %4104 = vmatpush3.bf16.msra.mxu0 %v4595_v33  ;;  %v2345_v33 = vpack.c.bf16 %v2325_v53, %v2324_v39 }
 0x12b   : > { %3912 = vmatpush3.bf16.msra.mxu1 %v4594_v55  ;;  %4137 = vmatprep.subr.bf16.mxu0 %v4596_v5  ;;  %v2328_v55 = vld [vmem:[%s4976_s13 + $0xe1] sm:$0xff] }
 0x12c   : > { %3882 = vmatmul.mubr.bf16.gmra.mrb[16].mxu1 %v5109_v23  ;;  %v2029_v23 = vld [vmem:[%s4976_s13 + $0x100] sm:$0xff] }
 0x12d   : > { %4074 = vmatmul.mubr.bf16.gmra.mrb[16].mxu0 %v5149_v57  ;;  %3885 = vmatprep.mubr.bf16.mxu1 %v5129_v42  ;;  %v2046_v41 = vpack.c.bf16 %v2030_v34, %v2029_v23  ;;  %v819_v42 = vld [vmem:[%s4976_s13 + $0xf2] sm:$0x1]  ;;  %v2331_v23 = vld [vmem:[%s4976_s13 + $0xf9] sm:$0xff]  ;;  %v2333_v34 = vld [vmem:[%s4976_s13 + $0x109] sm:$0xff] }
 0x12e   : > { %4077 = vmatprep.mubr.bf16.mxu0 %v5153_v59  ;;  %v835_v48 = vpack.c.bf16 %v819_v42, %v819_v42 }
 0x134   : > { %3886 = vmatmul.mubr.bf16.gmra.mrb[20].mxu1 %v5133_v44 }
 0x135   : > { %4078 = vmatmul.mubr.bf16.gmra.mrb[20].mxu0 %v5169_v9  ;;  %3889 = vmatprep.mubr.bf16.mxu1 %v5151_v58 }
 0x136   : > { %4081 = vmatprep.mubr.bf16.mxu0 %v5173_v11 }
 0x13c   : > { %3890 = vmatmul.mubr.bf16.gmra.mrb[24].mxu1 %v5155_v60 }
 0x13d   : > { %4082 = vmatmul.mubr.bf16.gmra.mrb[24].mxu0 %v5216_v35  ;;  %3893 = vmatprep.mubr.bf16.mxu1 %v5171_v10 }
 0x13e   : > { %4085 = vmatprep.mubr.bf16.mxu0 %v2046_v41 }
 0x144   : > { %3894 = vmatmul.mubr.bf16.gmra.mrb[36].mxu1 %v835_v48  ;;  %v2350_v48 = vpack.c.bf16 %v2334_v45, %v2334_v45 }
 0x145   : > { %4086 = vmatmul.mubr.bf16.gmra.mrb[36].mxu0 %v2047_v49  ;;  %3913 = vmatprep.mubr.bf16.mxu1 %v5041_v36  ;;  %v2312_v36 = vld [vmem:[%s4976_s13 + $0x61] sm:$0xff] }
 0x146   : > { %4105 = vmatprep.mubr.bf16.mxu0 %v2335_v50  ;;  %v2339_v15 = vpack.c.bf16 %v2313_v8, %v2312_v36  ;;  %v2610_v50 = vld [vmem:[%s4976_s13 + $0x3a] sm:$0xff]  ;;  %v2617_v36 = vld [vmem:[%s4976_s13 + $0x72] sm:$0xff] }
 0x147   : > { %v2618_v8 = vld [vmem:[%s4976_s13 + $0x7a] sm:$0xff] }
 0x148   : > { %v2643_v17 = vpack.c.bf16 %v2618_v8, %v2617_v36 }
 0x14c   : > { %3914 = vmatmul.mubr.bf16.vlgmr.msra.gmra.mrb[0].mxu1 %v5045_v38  ;;  %v4599_v38 = vld [vmem:[#allocation5 + $0x218] sm:$0xff]  }
 0x14d   : > { %4106 = vmatmul.mubr.bf16.vlgmr.msra.gmra.mrb[0].mxu0 %v2336_v63  ;;  %3917 = vmatprep.mubr.bf16.mxu1 %v5063_v52  ;;  %v2314_v52 = vld [vmem:[%s4976_s13 + $0x71] sm:$0xff]  ;;  %v2614_v63 = vld [vmem:[%s4976_s13 + $0x5a] sm:$0xff] }
 0x14e   : > { %4109 = vmatprep.mubr.bf16.mxu0 %v2337_v0  ;;  %4138 = vmatpush3.bf16.msra.mxu0 %v4596_v5  ;;  %v2340_v24 = vpack.c.bf16 %v2315_v16, %v2314_v52  ;;  %v2329_v5 = vld [vmem:[%s4976_s13 + $0xe9] sm:$0xff]  ;;  %v2641_v2 = vpack.c.bf16 %v2614_v63, %v2613_v62 }
 0x14f   : > { %4139 = vmatprep.subr.bf16.mxu0 %v4597_v1  ;;  %v2347_v21 = vpack.c.bf16 %v2329_v5, %v2328_v55  ;;  %v2615_v0 = vld [vmem:[%s4976_s13 + $0x62] sm:$0xff] }
 0x150   : > { %v3161_v62 = vld [vmem:[#allocation7 + $0x8] sm:$0xff] }
 0x152   : > { %4140 = vmatpush3.bf16.msra.mxu0 %v4597_v1  ;;  %v2616_v1 = vld [vmem:[%s4976_s13 + $0x6a] sm:$0xff] }
 0x153   : > { %4141 = vmatprep.subr.bf16.mxu0 %v4598_v13  ;;  %v2642_v4 = vpack.c.bf16 %v2616_v1, %v2615_v0 }
 0x154   : > { %3918 = vmatmul.mubr.bf16.gmra.mrb[4].mxu1 %v5067_v54  ;;  %v4601_v54 = vld [vmem:[#allocation5 + $0x228] sm:$0xff]  }
 0x155   : > { %4110 = vmatmul.mubr.bf16.gmra.mrb[4].mxu0 %v2338_v14  ;;  %3921 = vmatprep.mubr.bf16.mxu1 %v5083_v3  ;;  %v2318_v3 = vld [vmem:[%s4976_s13 + $0x91] sm:$0xff] }
 0x156   : > { %4113 = vmatprep.mubr.bf16.mxu0 %v2339_v15  ;;  %4142 = vmatpush3.bf16.msra.mxu0 %v4598_v13  ;;  %v2342_v37 = vpack.c.bf16 %v2319_v26, %v2318_v3  ;;  %v2619_v13 = vld [vmem:[%s4976_s13 + $0x82] sm:$0xff]  ;;  %v2620_v14 = vld [vmem:[%s4976_s13 + $0x8a] sm:$0xff]  ;;  %v2621_v3 = vld [vmem:[%s4976_s13 + $0x92] sm:$0xff] }
 0x157   : > { %4143 = vmatprep.subr.bf16.mxu0 %v4599_v38  ;;  %v2622_v26 = vld [vmem:[%s4976_s13 + $0x9a] sm:$0xff] }
 0x15a   : > { %4144 = vmatpush3.bf16.msra.mxu0 %v4599_v38 }
 0x15b   : > { %4145 = vmatprep.subr.bf16.mxu0 %v4600_v20 }
 0x15c   : > { %3922 = vmatmul.mubr.bf16.gmra.mrb[8].mxu1 %v5087_v6  ;;  %v4603_v6 = vld [vmem:[#allocation5 + $0x238] sm:$0xff]  }
 0x15d   : > { %4114 = vmatmul.mubr.bf16.gmra.mrb[8].mxu0 %v2340_v24  ;;  %3925 = vmatprep.mubr.bf16.mxu1 %v5103_v19  ;;  %v2322_v19 = vld [vmem:[%s4976_s13 + $0xb1] sm:$0xff]  ;;  %v2644_v24 = vpack.c.bf16 %v2620_v14, %v2619_v13 }
 0x15e   : > { %4117 = vmatprep.mubr.bf16.mxu0 %v2341_v25  ;;  %4146 = vmatpush3.bf16.msra.mxu0 %v4600_v20  ;;  %v2344_v32 = vpack.c.bf16 %v2323_v31, %v2322_v19  ;;  %v2637_v31 = vld [vmem:[%s4976_s13 + $0x112] sm:$0x1] }
 0x15f   : > { %4147 = vmatprep.subr.bf16.mxu0 %v4601_v54  ;;  %v2653_v39 = vpack.c.bf16 %v2637_v31, %v2637_v31 }
 0x162   : > { %4148 = vmatpush3.bf16.msra.mxu0 %v4601_v54 }
 0x163   : > { %4149 = vmatprep.subr.bf16.mxu0 %v4602_v27 }
 0x164   : > { %3926 = vmatmul.mubr.bf16.gmra.mrb[12].mxu1 %v5107_v22  ;;  %v2326_v22 = vld [vmem:[%s4976_s13 + $0xd1] sm:$0xff] }
 0x165   : > { %4118 = vmatmul.mubr.bf16.gmra.mrb[12].mxu0 %v2342_v37  ;;  %3929 = vmatprep.mubr.bf16.mxu1 %v5125_v40  ;;  %v2327_v40 = vld [vmem:[%s4976_s13 + $0xd9] sm:$0xff]  ;;  %v2646_v37 = vpack.c.bf16 %v2624_v29, %v2623_v28 }
 0x166   : > { %4121 = vmatprep.mubr.bf16.mxu0 %v2343_v30  ;;  %4150 = vmatpush3.bf16.msra.mxu0 %v4602_v27  ;;  %v2346_v7 = vpack.c.bf16 %v2327_v40, %v2326_v22  ;;  %v2645_v27 = vpack.c.bf16 %v2622_v26, %v2621_v3  ;;  %v2635_v30 = vld [vmem:[%s4976_s13 + $0x102] sm:$0xff] }
 0x167   : > { %4151 = vmatprep.subr.bf16.mxu0 %v4603_v6 }
 0x16a   : > { %4152 = vmatpush3.bf16.msra.mxu0 %v4603_v6  ;;  %v2636_v6 = vld [vmem:[%s4976_s13 + $0x10a] sm:$0xff] }
 0x16b   : > { %v2652_v19 = vpack.c.bf16 %v2636_v6, %v2635_v30 }
 0x16c   : > { %3930 = vmatmul.mubr.bf16.gmra.mrb[16].mxu1 %v5131_v43  ;;  %v2330_v43 = vld [vmem:[%s4976_s13 + $0xf1] sm:$0xff] }
 0x16d   : > { %4122 = vmatmul.mubr.bf16.gmra.mrb[16].mxu0 %v2344_v32  ;;  %3933 = vmatprep.mubr.bf16.mxu1 %v5149_v57  ;;  %v2332_v57 = vld [vmem:[%s4976_s13 + $0x101] sm:$0xff]  ;;  %v2348_v41 = vpack.c.bf16 %v2331_v23, %v2330_v43 }
 0x16e   : > { %4125 = vmatprep.mubr.bf16.mxu0 %v2345_v33  ;;  %v2349_v42 = vpack.c.bf16 %v2333_v34, %v2332_v57 }
 0x174   : > { %3934 = vmatmul.mubr.bf16.gmra.mrb[20].mxu1 %v5153_v59  ;;  %v1122_v59 = vld [vmem:[%s4976_s13 + $0x100] sm:$0x1] }
 0x175   : > { %4126 = vmatmul.mubr.bf16.gmra.mrb[20].mxu0 %v2346_v7  ;;  %3937 = vmatprep.mubr.bf16.mxu1 %v5169_v9  ;;  %v2607_v9 = vld [vmem:[%s4976_s13 + $0x22] sm:$0xff]  ;;  %v1138_v47 = vpack.c.bf16 %v1122_v59, %v1122_v59  ;;  %v4771_v7 = vmov 0.0|0.0  }
 0x176   : > { %4129 = vmatprep.mubr.bf16.mxu0 %v2347_v21  ;;  %v2638_v49 = vpack.c.bf16 %v2608_v46, %v2607_v9  ;;  %4185 = vmatprep.subr.bf16.mxu1 %v4771_v7 }
 0x17c   : > { %3938 = vmatmul.mubr.bf16.gmra.mrb[24].mxu1 %v5173_v11  ;;  %v2609_v11 = vld [vmem:[%s4976_s13 + $0x32] sm:$0xff] }
 0x17d   : > { %4130 = vmatmul.mubr.bf16.gmra.mrb[24].mxu0 %v2348_v41  ;;  %3941 = vmatprep.mubr.bf16.mxu1 %v5216_v35  ;;  %v2611_v35 = vld [vmem:[%s4976_s13 + $0x42] sm:$0xff]  ;;  %v2639_v56 = vpack.c.bf16 %v2610_v50, %v2609_v11 }
 0x17e   : > { %4133 = vmatprep.mubr.bf16.mxu0 %v2349_v42  ;;  %v2640_v61 = vpack.c.bf16 %v2612_v51, %v2611_v35 }
 0x184   : > { %3942 = vmatmul.mubr.bf16.gmra.mrb[40].mxu1 %v1138_v47 }
 0x185   : > { %4134 = vmatmul.mubr.bf16.gmra.mrb[40].mxu0 %v2350_v48  ;;  %3524 = vmatprep.mubr.msk.f32.mxu1 %vm3180_vm0, %v3161_v62 }
 0x186   : > { %4153 = vmatprep.mubr.bf16.mxu0 %v2638_v49 }
 0x18d   : > { %4154 = vmatmul.mubr.bf16.vlgmr.msra.gmra.mrb[0].mxu0 %v2639_v56 }
 0x18e   : > { %4157 = vmatprep.mubr.bf16.mxu0 %v2640_v61 }
 0x195   : > { %4158 = vmatmul.mubr.bf16.gmra.mrb[4].mxu0 %v2641_v2 }
 0x196   : > { %4161 = vmatprep.mubr.bf16.mxu0 %v2642_v4 }
 0x197   : > { %v3799_v15 = vpop.f32.mrb[28].mxu1 }
 0x198   : > { %v5284_v38 = vpop.f32.mrb[28].mxu0  ;;  %v567_v52 = vpop.f32.mrb[29].mxu1 }
 0x199   : > { %v5286_v16 = vpop.f32.mrb[29].mxu0  ;;  %v3800_v18 = vpop.f32.mrb[30].mxu1 }
 0x19a   : > { %v3992_v20 = vpop.f32.mrb[30].mxu0  ;;  %v570_v25 = vpop.f32.mrb[31].mxu1 }
 0x19b   : > { %v5288_v54 = vpop.f32.mrb[31].mxu0 }
 0x19d   : > { %4162 = vmatmul.mubr.bf16.gmra.mrb[8].mxu0 %v2643_v17 }
 0x19e   : > { %4165 = vmatprep.mubr.bf16.mxu0 %v2644_v24 }
 0x1a5   : > { %4166 = vmatmul.mubr.bf16.gmra.mrb[12].mxu0 %v2645_v27 }
 0x1a6   : > { %4169 = vmatprep.mubr.bf16.mxu0 %v2646_v37 }
 0x1ad   : > { %4170 = vmatmul.mubr.bf16.gmra.mrb[16].mxu0 %v5133_v44 }
 0x1ae   : > { %4173 = vmatprep.mubr.bf16.mxu0 %v5151_v58 }
 0x1b5   : > { %4174 = vmatmul.mubr.bf16.gmra.mrb[20].mxu0 %v5155_v60 }
 0x1b6   : > { %4177 = vmatprep.mubr.bf16.mxu0 %v5171_v10 }
 0x1bd   : > { %4178 = vmatmul.mubr.bf16.gmra.mrb[24].mxu0 %v5175_v12 }
 0x1be   : > { %4181 = vmatprep.mubr.bf16.mxu0 %v2652_v19 }
 0x1c5   : > { %4182 = vmatmul.mubr.bf16.gmra.mrb[44].mxu0 %v2653_v39 }
 0x1d7   : > { %v3847_v53 = vpop.f32.mrb[32].mxu1 }
 0x1d8   : > { %v784_v32 = vadd.f32 %v3847_v53, %v3799_v15  ;;  %v5302_v33 = vpop.f32.mrb[32].mxu0  ;;  %v775_v44 = vpop.f32.mrb[33].mxu1 }
 0x1d9   : > { %v776_v22 = vadd.f32 %v775_v44, %v567_v52  ;;  %v5304_v58 = vpop.f32.mrb[33].mxu0  ;;  %v3848_v60 = vpop.f32.mrb[34].mxu1 }
 0x1da   : > { %v4040_v40 = vpop.f32.mrb[34].mxu0  ;;  %v778_v10 = vpop.f32.mrb[35].mxu1 }
 0x1db   : > { %v779_v55 = vadd.f32 %v778_v10, %v570_v25  ;;  %v5306_v5 = vpop.f32.mrb[35].mxu0 }
 0x217   : > { %v3895_v12 = vpop.f32.mrb[36].mxu1 }
 0x218   : > { %v1091_v21 = vadd.f32 %v3895_v12, %v784_v32  ;;  %v4087_v43 = vpop.f32.mrb[36].mxu0  ;;  %v1047_v23 = vpop.f32.mrb[37].mxu1 }
 0x219   : > { %v1089_v57 = vadd.f32 %v1047_v23, %v776_v22  ;;  %v2259_v34 = vpop.f32.mrb[37].mxu0  ;;  %v3896_v41 = vpop.f32.mrb[38].mxu1 }
 0x21a   : > { %v4088_v42 = vpop.f32.mrb[38].mxu0  ;;  %v1050_v59 = vpop.f32.mrb[39].mxu1 }
 0x21b   : > { %v1090_v45 = vadd.f32 %v1050_v59, %v779_v55  ;;  %v2262_v9 = vpop.f32.mrb[39].mxu0 }
 0x21f   : > { %v3915_v46 = vpop.f32.mrb[0].mxu1 }
 0x220   : > { %v1238_v47 = vpop.f32.mrb[1].mxu1 }
 0x221   : > { %v3916_v48 = vpop.f32.mrb[2].mxu1 }
 0x222   : > { %v1241_v49 = vpop.f32.mrb[3].mxu1 }
 0x227   : > { %v5309_v11 = vpop.f32.mrb[4].mxu1 }
 0x228   : > { %v5311_v50 = vpop.f32.mrb[5].mxu1 }
 0x229   : > { %v5313_v35 = vpop.f32.mrb[6].mxu1 }
 0x22a   : > { %v5315_v51 = vpop.f32.mrb[7].mxu1 }
 0x22f   : > { %v5317_v56 = vpop.f32.mrb[8].mxu1 }
 0x230   : > { %v5319_v61 = vpop.f32.mrb[9].mxu1 }
 0x231   : > { %v5321_v63 = vpop.f32.mrb[10].mxu1 }
 0x232   : > { %v5324_v0 = vpop.f32.mrb[11].mxu1 }
 0x237   : > { %v5326_v1 = vpop.f32.mrb[12].mxu1 }
 0x238   : > { %v5328_v2 = vpop.f32.mrb[13].mxu1 }
 0x239   : > { %v5330_v4 = vpop.f32.mrb[14].mxu1 }
 0x23a   : > { %v5332_v36 = vpop.f32.mrb[15].mxu1 }
 0x23f   : > { %v5334_v8 = vpop.f32.mrb[16].mxu1 }
 0x240   : > { %v5336_v13 = vpop.f32.mrb[17].mxu1 }
 0x241   : > { %v5338_v14 = vpop.f32.mrb[18].mxu1 }
 0x242   : > { %v5340_v15 = vpop.f32.mrb[19].mxu1 }
 0x247   : > { %v5342_v52 = vpop.f32.mrb[20].mxu1 }
 0x248   : > { %v5344_v17 = vpop.f32.mrb[21].mxu1 }
 0x249   : > { %v5346_v18 = vpop.f32.mrb[22].mxu1 }
 0x24a   : > { %v5348_v20 = vpop.f32.mrb[23].mxu1 }
 0x24f   : > { %v5350_v24 = vpop.f32.mrb[24].mxu1 }
 0x250   : > { %v5352_v25 = vpop.f32.mrb[25].mxu1 }
 0x251   : > { %v5354_v3 = vpop.f32.mrb[26].mxu1 }
 0x252   : > { %v5356_v26 = vpop.f32.mrb[27].mxu1 }
 0x257   : > { %v3943_v28 = vpop.f32.mrb[40].mxu1 }
 0x258   : > { %v1394_v29 = vadd.f32 %v3943_v28, %v1091_v21  ;;  %v4135_v27 = vpop.f32.mrb[40].mxu0  ;;  %v1350_v37 = vpop.f32.mrb[41].mxu1 }
 0x259   : > { %v1392_v30 = vadd.f32 %v1350_v37, %v1089_v57  ;;  %v2562_v6 = vpop.f32.mrb[41].mxu0  ;;  %v3944_v19 = vpop.f32.mrb[42].mxu1 }
 0x25a   : > { %v1697_v31 = vadd.f32 %v5284_v38, %v1394_v29  ;;  %v4136_v39 = vpop.f32.mrb[42].mxu0  ;;  %v1353_v53 = vpop.f32.mrb[43].mxu1  ;;  %v5369_v38 = vld [vmem:[%s5583_s2] ss:$0 sm:$0xff] }
 0x25b   : > { %v1695_v32 = vadd.f32 %v5286_v16, %v1392_v30  ;;  %v1393_v44 = vadd.f32 %v1353_v53, %v1090_v45  ;;  %v2565_v22 = vpop.f32.mrb[43].mxu0 }
 0x25c   : > { %v2000_v60 = vadd.f32 %v5302_v33, %v1697_v31 }
 0x25d   : > { %v1998_v40 = vadd.f32 %v5304_v58, %v1695_v32  ;;  %v1696_v10 = vadd.f32 %v5288_v54, %v1393_v44 }
 0x25e   : > { %v2303_v55 = vadd.f32 %v4087_v43, %v2000_v60 }
 0x25f   : > { %v2301_v12 = vadd.f32 %v2259_v34, %v1998_v40  ;;  %v1999_v21 = vadd.f32 %v5306_v5, %v1696_v10 }
 0x260   : > { %v5364_v23 = vadd.f32 %v4135_v27, %v2303_v55  ;;  %v4155_v57 = vpop.f32.mrb[0].mxu0 }
 0x261   : > { %v5371_v16 = vadd.f32 %v2562_v6, %v2301_v12  ;;  %v2302_v41 = vadd.f32 %v2262_v9, %v1999_v21  ;;  %v4227_v33 = vadd.f32 %v4155_v57, %v3915_v46  ;;  %v2753_v42 = vpop.f32.mrb[1].mxu0 }
 0x262   : > { %v4228_v58 = vadd.f32 %v2753_v42, %v1238_v47  ;;  %v4156_v59 = vpop.f32.mrb[2].mxu0 }
 0x263   : > { %v5373_v54 = vadd.f32 %v2565_v22, %v2302_v41  ;;  %v2919_v43 = vadd.f32 %v4227_v33, %v5369_v38  ;;  %v4229_v5 = vadd.f32 %v4156_v59, %v3916_v48  ;;  %v2756_v34 = vpop.f32.mrb[3].mxu0 }
 0x264   : > { %v2917_v45 = vadd.f32 %v4228_v58, %v5369_v38  ;;  %v4230_v62 = vadd.f32 %v2756_v34, %v1241_v49 }
 0x265   : > { %v2950_v28 = vmax.f32 %v2919_v43, 0.0  ;;  %v2920_v29 = vadd.f32 %v4229_v5, %v5369_v38 }
 0x266   : > { %v2948_v27 = vmax.f32 %v2917_v45, 0.0  ;;  %v2918_v37 = vadd.f32 %v4230_v62, %v5369_v38 }
 0x267   : > { %v2951_v9 = vmax.f32 %v2920_v29, 0.0  ;;  %v3014_v30 = vrot.slane %v2950_v28, 1 }
 0x268   : > { %v2949_v46 = vmax.f32 %v2918_v37, 0.0  ;;  %v4159_v47 = vpop.f32.mrb[4].mxu0  ;;  %v3011_v48 = vrot.slane %v2948_v27, 1 }
 0x269   : > { %v3016_v6 = vrot.slane %v2951_v9, 1  ;;  %v4231_v19 = vadd.f32 %v4159_v47, %v5309_v11  ;;  %v2769_v31 = vpop.f32.mrb[5].mxu0 }
 0x26a   : > { %v3012_v39 = vrot.slane %v2949_v46, 1  ;;  %v4232_v53 = vadd.f32 %v2769_v31, %v5311_v50  ;;  %v4160_v49 = vpop.f32.mrb[6].mxu0 }
 0x26b   : > { %v3017_v32 = vsel %vm3010_vm1, %v3014_v30, %v3016_v6  ;;  %v2923_v44 = vadd.f32 %v4231_v19, %v5369_v38  ;;  %v4233_v22 = vadd.f32 %v4160_v49, %v5313_v35  ;;  %v2772_v60 = vpop.f32.mrb[7].mxu0 }
 0x26c   : > { %v5384_v40 = vmax.f32 %v2950_v28, %v3017_v32  ;;  %v3013_v10 = vsel %vm3010_vm1, %v3011_v48, %v3012_v39  ;;  %v3015_v55 = vsel %vm3010_vm1, %v3012_v39, %v3014_v30  ;;  %v2921_v11 = vadd.f32 %v4232_v53, %v5369_v38 }
 0x26d   : > { %v3102_v12 = vmax.f32 %v2948_v27, %v3013_v10  ;;  %v3103_v21 = vmax.f32 %v2949_v46, %v3015_v55  ;;  %v2954_v57 = vmax.f32 %v2923_v44, 0.0  ;;  %v2924_v50 = vadd.f32 %v4233_v22, %v5369_v38 }
 0x26e   : > { %v2952_v41 = vmax.f32 %v2921_v11, 0.0  ;;  %v4234_v33 = vadd.f32 %v2772_v60, %v5315_v51 }
 0x26f   : > { %v2955_v42 = vmax.f32 %v2924_v50, 0.0  ;;  %v3132_v35 = vmax.f32 %v3102_v12, %v5384_v40  ;;  %v3022_v5 = vrot.slane %v2954_v57, 1 }
 0x270   : > { %v3018_v58 = vrot.slane %v2952_v41, 1  ;;  %v2922_v59 = vadd.f32 %v4234_v33, %v5369_v38  ;;  %v4163_v43 = vpop.f32.mrb[8].mxu0 }
 0x271   : > { %v3024_v34 = vrot.slane %v2955_v42, 1  ;;  %v4235_v45 = vadd.f32 %v4163_v43, %v5317_v56  ;;  %v2785_v62 = vpop.f32.mrb[9].mxu0 }
 0x272   : > { %v3019_v28 = vsel %vm3010_vm1, %v3016_v6, %v3018_v58  ;;  %v2953_v29 = vmax.f32 %v2922_v59, 0.0  ;;  %v4236_v27 = vadd.f32 %v2785_v62, %v5319_v61  ;;  %v4164_v37 = vpop.f32.mrb[10].mxu0 }
 0x273   : > { %v3025_v51 = vsel %vm3010_vm1, %v3022_v5, %v3024_v34  ;;  %v3105_v46 = vmax.f32 %v2951_v9, %v3019_v28  ;;  %v2927_v47 = vadd.f32 %v4235_v45, %v5369_v38  ;;  %v4237_v30 = vadd.f32 %v4164_v37, %v5321_v63  ;;  %v2788_v19 = vpop.f32.mrb[11].mxu0 }
 0x274   : > { %v5399_v31 = vmax.f32 %v2954_v57, %v3025_v51  ;;  %v3020_v48 = vrot.slane %v2953_v29, 1  ;;  %v2925_v56 = vadd.f32 %v4236_v27, %v5369_v38  ;;  %v4238_v39 = vadd.f32 %v2788_v19, %v5324_v0 }
 0x275   : > { %v2958_v6 = vmax.f32 %v2927_v47, 0.0  ;;  %v5404_v53 = vadd.f32 %v4237_v30, %v5369_v38  ;;  %v3133_v61 = vmax.f32 %v3103_v21, %v3105_v46 }
 0x276   : > { %v3021_v49 = vsel %vm3010_vm1, %v3018_v58, %v3020_v48  ;;  %v3023_v9 = vsel %vm3010_vm1, %v3020_v48, %v3022_v5  ;;  %v2956_v32 = vmax.f32 %v2925_v56, 0.0  ;;  %v2926_v63 = vadd.f32 %v4238_v39, %v5369_v38 }
 0x277   : > { %v3106_v44 = vmax.f32 %v2952_v41, %v3021_v49  ;;  %v3107_v22 = vmax.f32 %v2953_v29, %v3023_v9  ;;  %v2959_v60 = vmax.f32 %v5404_v53, 0.0  ;;  %v3030_v10 = vrot.slane %v2958_v6, 1 }
 0x278   : > { %v3026_v55 = vrot.slane %v2956_v32, 1  ;;  %v2957_v11 = vmax.f32 %v2926_v63, 0.0  ;;  %v4167_v0 = vpop.f32.mrb[12].mxu0  ;;  %v4186_v12 = vpack.c.bf16 %v3133_v61, %v3132_v35 }
 0x279   : > { %v3135_v57 = vmax.f32 %v3105_v46, %v3107_v22  ;;  %v3032_v50 = vrot.slane %v2959_v60, 1  ;;  %v4239_v21 = vadd.f32 %v4167_v0, %v5326_v1  ;;  %v2801_v33 = vpop.f32.mrb[13].mxu0  ;;  %v3134_v58 = vmax.f32 %v5384_v40, %v3106_v44 }
 0x27a   : > { %v3027_v59 = vsel %vm3010_vm1, %v3024_v34, %v3026_v55  ;;  %v3028_v43 = vrot.slane %v2957_v11, 1  ;;  %v4240_v41 = vadd.f32 %v2801_v33, %v5328_v2  ;;  %4187 = vmatpush1.bf16.msra.mxu1 %v4186_v12  ;;  %v4168_v5 = vpop.f32.mrb[14].mxu0  ;;  %v3136_v45 = vmax.f32 %v3106_v44, %v5399_v31 }
 0x27b   : > { %v3033_v62 = vsel %vm3010_vm1, %v3030_v10, %v3032_v50  ;;  %v3109_v28 = vmax.f32 %v2955_v42, %v3027_v59  ;;  %v2931_v35 = vadd.f32 %v4239_v21, %v5369_v38  ;;  %v4241_v29 = vadd.f32 %v4168_v5, %v5330_v4  ;;  %v2804_v1 = vpop.f32.mrb[15].mxu0  ;;  %4188 = vmatprep.subr.bf16.mxu1 %v4771_v7 }
 0x27c   : > { %v5419_v40 = vmax.f32 %v2958_v6, %v3033_v62  ;;  %v3029_v34 = vsel %vm3010_vm1, %v3026_v55, %v3028_v43  ;;  %v3031_v2 = vsel %vm3010_vm1, %v3028_v43, %v3030_v10  ;;  %v2929_v27 = vadd.f32 %v4240_v41, %v5369_v38 }
 0x27d   : > { %v3110_v37 = vmax.f32 %v2956_v32, %v3029_v34  ;;  %v3111_v51 = vmax.f32 %v2957_v11, %v3031_v2  ;;  %v2962_v46 = vmax.f32 %v2931_v35, 0.0  ;;  %v5425_v42 = vadd.f32 %v4241_v29, %v5369_v38 }
 0x27e   : > { %v2960_v47 = vmax.f32 %v2929_v27, 0.0  ;;  %v4242_v4 = vadd.f32 %v2804_v1, %v5332_v36  ;;  %v4189_v30 = vpack.c.bf16 %v3135_v57, %v3134_v58  ;;  %v3137_v19 = vmax.f32 %v3107_v22, %v3109_v28 }
 0x27f   : > { %v3139_v48 = vmax.f32 %v3109_v28, %v3111_v51  ;;  %v2963_v56 = vmax.f32 %v5425_v42, 0.0  ;;  %v3138_v39 = vmax.f32 %v5399_v31, %v3110_v37  ;;  %v3140_v9 = vmax.f32 %v3110_v37, %v5419_v40 }
 0x280   : > { %v3034_v6 = vrot.slane %v2960_v47, 1  ;;  %v2930_v53 = vadd.f32 %v4242_v4, %v5369_v38  ;;  %4190 = vmatpush1.bf16.msra.mxu1 %v4189_v30  ;;  %v4171_v61 = vpop.f32.mrb[16].mxu0  ;;  %v4192_v49 = vpack.c.bf16 %v3137_v19, %v3136_v45  ;;  %v3038_v32 = vrot.slane %v2962_v46, 1 }
 0x281   : > { %v3040_v63 = vrot.slane %v2963_v56, 1  ;;  %v4243_v44 = vadd.f32 %v4171_v61, %v5334_v8  ;;  %4191 = vmatprep.subr.bf16.mxu1 %v4771_v7  ;;  %v2817_v36 = vpop.f32.mrb[17].mxu0  ;;  %v4195_v22 = vpack.c.bf16 %v3139_v48, %v3138_v39 }
 0x282   : > { %v3035_v10 = vsel %vm3010_vm1, %v3032_v50, %v3034_v6  ;;  %v2961_v55 = vmax.f32 %v2930_v53, 0.0  ;;  %v4244_v31 = vadd.f32 %v2817_v36, %v5336_v13  ;;  %v4172_v11 = vpop.f32.mrb[18].mxu0 }
 0x283   : > { %v3041_v0 = vsel %vm3010_vm1, %v3038_v32, %v3040_v63  ;;  %v3113_v12 = vmax.f32 %v2959_v60, %v3035_v10  ;;  %v2935_v57 = vadd.f32 %v4243_v44, %v5369_v38  ;;  %v4245_v21 = vadd.f32 %v4172_v11, %v5338_v14  ;;  %v2820_v33 = vpop.f32.mrb[19].mxu0 }
 0x284   : > { %v5439_v58 = vmax.f32 %v2962_v46, %v3041_v0  ;;  %v3036_v8 = vrot.slane %v2961_v55, 1  ;;  %v2933_v59 = vadd.f32 %v4244_v31, %v5369_v38  ;;  %4193 = vmatpush1.bf16.msra.mxu1 %v4192_v49  ;;  %v4246_v50 = vadd.f32 %v2820_v33, %v5340_v15 }
 0x285   : > { %v2966_v43 = vmax.f32 %v2935_v57, 0.0  ;;  %v5444_v13 = vadd.f32 %v4245_v21, %v5369_v38  ;;  %4194 = vmatprep.subr.bf16.mxu1 %v4771_v7  ;;  %v3141_v60 = vmax.f32 %v3111_v51, %v3113_v12 }
 0x286   : > { %v3037_v41 = vsel %vm3010_vm1, %v3034_v6, %v3036_v8  ;;  %v3039_v14 = vsel %vm3010_vm1, %v3036_v8, %v3038_v32  ;;  %v2964_v5 = vmax.f32 %v2933_v59, 0.0  ;;  %v2934_v45 = vadd.f32 %v4246_v50, %v5369_v38 }
 0x287   : > { %v3114_v62 = vmax.f32 %v2960_v47, %v3037_v41  ;;  %v3115_v28 = vmax.f32 %v2961_v55, %v3039_v14  ;;  %v2967_v35 = vmax.f32 %v5444_v13, 0.0  ;;  %v3046_v29 = vrot.slane %v2966_v43, 1 }
 0x288   : > { %v3042_v15 = vrot.slane %v2964_v5, 1  ;;  %v2965_v1 = vmax.f32 %v2934_v45, 0.0  ;;  %4196 = vmatpush1.bf16.msra.mxu1 %v4195_v22  ;;  %v4175_v34 = vpop.f32.mrb[20].mxu0  ;;  %v4198_v2 = vpack.c.bf16 %v3141_v60, %v3140_v9 }
 0x289   : > { %v3143_v27 = vmax.f32 %v3113_v12, %v3115_v28  ;;  %v3048_v37 = vrot.slane %v2967_v35, 1  ;;  %v4247_v51 = vadd.f32 %v4175_v34, %v5342_v52  ;;  %4197 = vmatprep.subr.bf16.mxu1 %v4771_v7  ;;  %v2833_v46 = vpop.f32.mrb[21].mxu0  ;;  %v3142_v42 = vmax.f32 %v5419_v40, %v3114_v62 }
 0x28a   : > { %v3043_v47 = vsel %vm3010_vm1, %v3040_v63, %v3042_v15  ;;  %v3044_v4 = vrot.slane %v2965_v1, 1  ;;  %v4248_v30 = vadd.f32 %v2833_v46, %v5344_v17  ;;  %v4176_v19 = vpop.f32.mrb[22].mxu0  ;;  %v3144_v48 = vmax.f32 %v3114_v62, %v5439_v58 }
 0x28b   : > { %v3049_v39 = vsel %vm3010_vm1, %v3046_v29, %v3048_v37  ;;  %v3117_v6 = vmax.f32 %v2963_v56, %v3043_v47  ;;  %v2939_v53 = vadd.f32 %v4247_v51, %v5369_v38  ;;  %v4249_v52 = vadd.f32 %v4176_v19, %v5346_v18  ;;  %v2836_v61 = vpop.f32.mrb[23].mxu0 }
 0x28c   : > { %v5460_v49 = vmax.f32 %v2966_v43, %v3049_v39  ;;  %v3045_v40 = vsel %vm3010_vm1, %v3042_v15, %v3044_v4  ;;  %v3047_v9 = vsel %vm3010_vm1, %v3044_v4, %v3046_v29  ;;  %v2937_v32 = vadd.f32 %v4248_v30, %v5369_v38  ;;  %4199 = vmatpush1.bf16.msra.mxu1 %v4198_v2 }
 0x28d   : > { %v3118_v17 = vmax.f32 %v2964_v5, %v3045_v40  ;;  %v3119_v63 = vmax.f32 %v2965_v1, %v3047_v9  ;;  %v2970_v44 = vmax.f32 %v2939_v53, 0.0  ;;  %v5466_v36 = vadd.f32 %v4249_v52, %v5369_v38  ;;  %4200 = vmatprep.subr.bf16.mxu1 %v4771_v7 }
 0x28e   : > { %v2968_v56 = vmax.f32 %v2937_v32, 0.0  ;;  %v4250_v18 = vadd.f32 %v2836_v61, %v5348_v20  ;;  %v4201_v22 = vpack.c.bf16 %v3143_v27, %v3142_v42  ;;  %v3145_v10 = vmax.f32 %v3115_v28, %v3117_v6 }
 0x28f   : > { %v3147_v55 = vmax.f32 %v3117_v6, %v3119_v63  ;;  %v2971_v31 = vmax.f32 %v5466_v36, 0.0  ;;  %v3146_v11 = vmax.f32 %v5439_v58, %v3118_v17  ;;  %v3148_v33 = vmax.f32 %v3118_v17, %v5460_v49 }
 0x290   : > { %v3050_v0 = vrot.slane %v2968_v56, 1  ;;  %v2938_v12 = vadd.f32 %v4250_v18, %v5369_v38  ;;  %4202 = vmatpush1.bf16.msra.mxu1 %v4201_v22  ;;  %v4179_v57 = vpop.f32.mrb[24].mxu0  ;;  %v4204_v21 = vpack.c.bf16 %v3145_v10, %v3144_v48  ;;  %v3054_v8 = vrot.slane %v2970_v44, 1 }
 0x291   : > { %v3056_v59 = vrot.slane %v2971_v31, 1  ;;  %v4251_v50 = vadd.f32 %v4179_v57, %v5350_v24  ;;  %4203 = vmatprep.subr.bf16.mxu1 %v4771_v7  ;;  %v2849_v20 = vpop.f32.mrb[25].mxu0  ;;  %v4207_v43 = vpack.c.bf16 %v3147_v55, %v3146_v11 }
 0x292   : > { %v3051_v13 = vsel %vm3010_vm1, %v3048_v37, %v3050_v0  ;;  %v2969_v60 = vmax.f32 %v2938_v12, 0.0  ;;  %v4252_v58 = vadd.f32 %v2849_v20, %v5352_v25  ;;  %v4180_v41 = vpop.f32.mrb[26].mxu0 }
 0x293   : > { %v3057_v14 = vsel %vm3010_vm1, %v3054_v8, %v3056_v59  ;;  %v3121_v5 = vmax.f32 %v2967_v35, %v3051_v13  ;;  %v2943_v45 = vadd.f32 %v4251_v50, %v5369_v38  ;;  %v4253_v62 = vadd.f32 %v4180_v41, %v5354_v3  ;;  %v2852_v28 = vpop.f32.mrb[27].mxu0 }
 0x294   : > { %v3124_v29 = vmax.f32 %v2970_v44, %v3057_v14  ;;  %v3052_v24 = vrot.slane %v2969_v60, 1  ;;  %v2941_v15 = vadd.f32 %v4252_v58, %v5369_v38  ;;  %4205 = vmatpush1.bf16.msra.mxu1 %v4204_v21  ;;  %v4254_v1 = vadd.f32 %v2852_v28, %v5356_v26 }
 0x295   : > { %v2974_v34 = vmax.f32 %v2943_v45, 0.0  ;;  %v2944_v2 = vadd.f32 %v4253_v62, %v5369_v38  ;;  %4206 = vmatprep.subr.bf16.mxu1 %v4771_v7  ;;  %v3149_v25 = vmax.f32 %v3119_v63, %v3121_v5 }
 0x296   : > { %v3053_v35 = vsel %vm3010_vm1, %v3050_v0, %v3052_v24  ;;  %v3055_v27 = vsel %vm3010_vm1, %v3052_v24, %v3054_v8  ;;  %v2972_v37 = vmax.f32 %v2941_v15, 0.0  ;;  %v2942_v3 = vadd.f32 %v4254_v1, %v5369_v38  ;;  %v3160_v15 = vld [vmem:[#allocation7] sm:$0xff]  ;;  %v3163_v1 = vld [vmem:[#allocation7 + $0x18] sm:$0xff] }
 0x297   : > { %v3122_v51 = vmax.f32 %v2968_v56, %v3053_v35  ;;  %v3123_v46 = vmax.f32 %v2969_v60, %v3055_v27  ;;  %v2975_v42 = vmax.f32 %v2944_v2, 0.0  ;;  %v3062_v47 = vrot.slane %v2974_v34, 1  ;;  %v3165_v2 = vld [vmem:[#allocation7 + $0x28] sm:$0xff]  ;;  %v3167_v35 = vld [vmem:[#allocation7 + $0x38] sm:$0xff]  ;;  %v3166_v27 = vld [vmem:[#allocation7 + $0x30] sm:$0xff] }
 0x298   : > { %v3058_v4 = vrot.slane %v2972_v37, 1  ;;  %v2973_v30 = vmax.f32 %v2942_v3, 0.0  ;;  %4208 = vmatpush1.bf16.msra.mxu1 %v4207_v43  ;;  %v4183_v26 = vpop.f32.mrb[44].mxu0  ;;  %v4210_v19 = vpack.c.bf16 %v3149_v25, %v3148_v33  ;;  %v3164_v25 = vld [vmem:[#allocation7 + $0x20] sm:$0xff]  ;;  %v3171_v3 = vld [vmem:[#allocation7 + $0x58] sm:$0xff] }
 0x299   : > { %v3151_v48 = vmax.f32 %v3121_v5, %v3123_v46  ;;  %v3064_v39 = vrot.slane %v2975_v42, 1  ;;  %v2909_v6 = vadd.f32 %v4183_v26, %v5364_v23  ;;  %4209 = vmatprep.subr.bf16.mxu1 %v4771_v7  ;;  %v2865_v53 = vpop.f32.mrb[45].mxu0  ;;  %v3150_v52 = vmax.f32 %v5460_v49, %v3122_v51  ;;  %v3176_v26 = vld [vmem:[#allocation7 + $0x80] sm:$0xff] }
 0x29a   : > { %v3059_v61 = vsel %vm3010_vm1, %v3056_v59, %v3058_v4  ;;  %v3060_v40 = vrot.slane %v2973_v30, 1  ;;  %v2907_v9 = vadd.f32 %v2865_v53, %v5371_v16  ;;  %v4184_v32 = vpop.f32.mrb[46].mxu0  ;;  %v3152_v17 = vmax.f32 %v3122_v51, %v3124_v29  ;;  %v3170_v51 = vld [vmem:[#allocation7 + $0x50] sm:$0xff] }
 0x29b   : > { %v3065_v63 = vsel %vm3010_vm1, %v3062_v47, %v3064_v39  ;;  %v3125_v44 = vmax.f32 %v2971_v31, %v3059_v61  ;;  %v2947_v36 = vadd.f32 %v5369_v38, %v2909_v6  ;;  %v2868_v56 = vpop.f32.mrb[47].mxu0  ;;  %v4213_v18 = vpack.c.bf16 %v3151_v48, %v3150_v52  ;;  %v3178_v48 = vld [vmem:[#allocation7 + $0x90] sm:$0xff] }
 0x29c   : > { %v3128_v23 = vmax.f32 %v2974_v34, %v3065_v63  ;;  %v3061_v22 = vsel %vm3010_vm1, %v3058_v4, %v3060_v40  ;;  %v3063_v10 = vsel %vm3010_vm1, %v3060_v40, %v3062_v47  ;;  %v2945_v49 = vadd.f32 %v5369_v38, %v2907_v9  ;;  %4211 = vmatpush1.bf16.msra.mxu1 %v4210_v19  ;;  %v3162_v34 = vld [vmem:[#allocation7 + $0x10] sm:$0xff]  ;;  %v3175_v47 = vld [vmem:[#allocation7 + $0x78] sm:$0xff] }
 0x29d   : > { %v3126_v55 = vmax.f32 %v2972_v37, %v3061_v22  ;;  %v3127_v11 = vmax.f32 %v2973_v30, %v3063_v10  ;;  %v2908_v16 = vadd.f32 %v2868_v56, %v5373_v54  ;;  %4212 = vmatprep.subr.bf16.mxu1 %v4771_v7  ;;  %v3153_v31 = vmax.f32 %v3123_v46, %v3125_v44  ;;  %v3169_v37 = vld [vmem:[#allocation7 + $0x48] sm:$0xff]  ;;  %v3174_v4 = vld [vmem:[#allocation7 + $0x70] sm:$0xff]  ;;  %v3179_v19 = vld [vmem:[#allocation7 + $0x98] sm:$0xff] }
 0x29e   : > { %v2976_v0 = vmax.f32 %v2945_v49, 0.0  ;;  %v2978_v57 = vmax.f32 %v2947_v36, 0.0  ;;  %v3173_v46 = vld [vmem:[#allocation7 + $0x68] sm:$0xff] }
 0x29f   : > { %v3155_v12 = vmax.f32 %v3125_v44, %v3127_v11  ;;  %v2946_v21 = vadd.f32 %v5369_v38, %v2908_v16  ;;  %v3154_v33 = vmax.f32 %v3124_v29, %v3126_v55  ;;  %v4216_v59 = vpack.c.bf16 %v3153_v31, %v3152_v17  ;;  %v3177_v30 = vld [vmem:[#allocation7 + $0x88] sm:$0xff] }
 0x2a0   : > { %v3066_v8 = vrot.slane %v2976_v0, 1  ;;  %4214 = vmatpush1.bf16.msra.mxu1 %v4213_v18  ;;  %v3156_v50 = vmax.f32 %v3126_v55, %v3128_v23  ;;  %v3070_v54 = vrot.slane %v2978_v57, 1 }
 0x2a1   : > { %v2977_v20 = vmax.f32 %v2946_v21, 0.0  ;;  %4215 = vmatprep.subr.bf16.mxu1 %v4771_v7  ;;  %v4219_v43 = vpack.c.bf16 %v3155_v12, %v3154_v33 }
 0x2a2   : > { %v3067_v13 = vsel %vm3010_vm1, %v3064_v39, %v3066_v8 }
 0x2a3   : > { %v3068_v60 = vrot.slane %v2977_v20, 1  ;;  %v3129_v58 = vmax.f32 %v2975_v42, %v3067_v13  ;;  %v3172_v42 = vld [vmem:[#allocation7 + $0x60] sm:$0xff] }
 0x2a4   : > { %4217 = vmatpush1.bf16.msra.mxu1 %v4216_v59 }
 0x2a5   : > { %v3069_v41 = vsel %vm3010_vm1, %v3066_v8, %v3068_v60  ;;  %v3071_v14 = vsel %vm3010_vm1, %v3068_v60, %v3070_v54  ;;  %4218 = vmatprep.subr.bf16.mxu1 %v4771_v7  ;;  %v3157_v38 = vmax.f32 %v3127_v11, %v3129_v58 }
 0x2a6   : > { %v3130_v5 = vmax.f32 %v2976_v0, %v3069_v41  ;;  %v3131_v45 = vmax.f32 %v2977_v20, %v3071_v14 }
 0x2a7   : > { %v4222_v62 = vpack.c.bf16 %v3157_v38, %v3156_v50 }
 0x2a8   : > { %v3159_v28 = vmax.f32 %v3129_v58, %v3131_v45  ;;  %4220 = vmatpush1.bf16.msra.mxu1 %v4219_v43  ;;  %v3158_v29 = vmax.f32 %v3128_v23, %v3130_v5 }
 0x2a9   : > { %4221 = vmatprep.subr.bf16.mxu1 %v4771_v7 }
 0x2aa   : > { %v4225_v24 = vpack.c.bf16 %v3159_v28, %v3158_v29 }
 0x2ac   : > { %4223 = vmatpush1.bf16.msra.mxu1 %v4222_v62 }
 0x2ad   : > { %4224 = vmatprep.subr.bf16.mxu1 %v4771_v7  ;;  %v3168_v7 = vld [vmem:[#allocation7 + $0x40] sm:$0xff] }
 0x2b0   : > { %4226 = vmatpush1.bf16.msra.mxu1 %v4225_v24 }
 0x2b3   : > { %3276 = vmatmul.mubr.f32.vlgmr.msra.gmra.mrb[44].mxu1 %v3160_v15 }
 0x2b4   : > { %3525 = vmatprep.mubr.msk.f32.mxu1 %vm3180_vm0, %v3163_v1 }
 0x2b7   : > { %3281 = vmatmul.mubr.f32.gmra.mrb[46].mxu1 %v3162_v34 }
 0x2b8   : > { %3526 = vmatprep.mubr.msk.f32.mxu1 %vm3180_vm0, %v3165_v2 }
 0x2bb   : > { %3286 = vmatmul.mubr.f32.gmra.mrb[48].mxu1 %v3164_v25 }
 0x2bc   : > { %3527 = vmatprep.mubr.msk.f32.mxu1 %vm3180_vm0, %v3167_v35 }
 0x2bf   : > { %3291 = vmatmul.mubr.f32.gmra.mrb[50].mxu1 %v3166_v27 }
 0x2c0   : > { %3528 = vmatprep.mubr.msk.f32.mxu1 %vm3180_vm0, %v3169_v37 }
 0x2c3   : > { %3296 = vmatmul.mubr.f32.gmra.mrb[52].mxu1 %v3168_v7 }
 0x2c4   : > { %3529 = vmatprep.mubr.msk.f32.mxu1 %vm3180_vm0, %v3171_v3 }
 0x2c7   : > { %3301 = vmatmul.mubr.f32.gmra.mrb[54].mxu1 %v3170_v51 }
 0x2c8   : > { %3530 = vmatprep.mubr.msk.f32.mxu1 %vm3180_vm0, %v3173_v46 }
 0x2cb   : > { %3306 = vmatmul.mubr.f32.gmra.mrb[56].mxu1 %v3172_v42 }
 0x2cc   : > { %3531 = vmatprep.mubr.msk.f32.mxu1 %vm3180_vm0, %v3175_v47 }
 0x2cf   : > { %3311 = vmatmul.mubr.f32.gmra.mrb[58].mxu1 %v3174_v4 }
 0x2d0   : > { %3532 = vmatprep.mubr.msk.f32.mxu1 %vm3180_vm0, %v3177_v30 }
 0x2d3   : > { %3316 = vmatmul.mubr.f32.gmra.mrb[60].mxu1 %v3176_v26 }
 0x2d4   : > { %3533 = vmatprep.mubr.msk.f32.mxu1 %vm3180_vm0, %v3179_v19 }
 0x2d7   : > { %3321 = vmatmul.mubr.f32.gmra.mrb[62].mxu1 %v3178_v48 }
 0x386   : > { %v3277_v39 = vpop.f32.mrb[44].mxu1 }
 0x387   : > { %3326 = vst [vmem:[%s5518_s5] sm:$0xff] %v3277_v39  ;;  %v3279_v6 = vpop.f32.mrb[45].mxu1 }
 0x38a   : > { %v3282_v53 = vpop.f32.mrb[46].mxu1 }
 0x38b   : > { %3327 = vst [vmem:[%s5518_s5 + $0x8] sm:$0xff] %v3282_v53  ;;  %v3284_v52 = vpop.f32.mrb[47].mxu1 }
 0x38e   : > { %v3287_v61 = vpop.f32.mrb[48].mxu1 }
 0x38f   : > { %3328 = vst [vmem:[%s5518_s5 + $0x10] sm:$0xff] %v3287_v61  ;;  %v3289_v40 = vpop.f32.mrb[49].mxu1 }
 0x392   : > { %v3292_v9 = vpop.f32.mrb[50].mxu1 }
 0x393   : > { %3329 = vst [vmem:[%s5518_s5 + $0x18] sm:$0xff] %v3292_v9  ;;  %v3294_v32 = vpop.f32.mrb[51].mxu1 }
 0x396   : > { %v3297_v17 = vpop.f32.mrb[52].mxu1 }
 0x397   : > { %3330 = vst [vmem:[%s5518_s5 + $0x20] sm:$0xff] %v3297_v17  ;;  %v3299_v63 = vpop.f32.mrb[53].mxu1 }
 0x39a   : > { %v3302_v44 = vpop.f32.mrb[54].mxu1 }
 0x39b   : > { %3331 = vst [vmem:[%s5518_s5 + $0x28] sm:$0xff] %v3302_v44  ;;  %v3304_v36 = vpop.f32.mrb[55].mxu1 }
 0x39e   : > { %v3307_v56 = vpop.f32.mrb[56].mxu1 }
 0x39f   : > { %3332 = vst [vmem:[%s5518_s5 + $0x30] sm:$0xff] %v3307_v56  ;;  %v3309_v18 = vpop.f32.mrb[57].mxu1 }
 0x3a2   : > { %v3312_v23 = vpop.f32.mrb[58].mxu1 }
 0x3a3   : > { %3333 = vst [vmem:[%s5518_s5 + $0x38] sm:$0xff] %v3312_v23  ;;  %v3314_v22 = vpop.f32.mrb[59].mxu1 }
 0x3a6   : > { %v3317_v10 = vpop.f32.mrb[60].mxu1 }
 0x3a7   : > { %3334 = vst [vmem:[%s5518_s5 + $0x40] sm:$0xff] %v3317_v10  ;;  %v3319_v49 = vpop.f32.mrb[61].mxu1 }
 0x3aa   : > { %v3322_v55 = vpop.f32.mrb[62].mxu1 }
 0x3ab   : > { %3335 = vst [vmem:[%s5518_s5 + $0x48] sm:$0xff] %v3322_v55  ;;  %v3324_v11 = vpop.f32.mrb[63].mxu1 }
 0x3ac   : > { %4703 = shalt.err (!%p4700_p2)
}
 0x3ad   : > { %s4704_s10 = scalar_lea.hbm %s5536_s24, 1280  ;;  %s4708_s21 = scalar_lea.hbm %s5585_s4, 2560 }
 0x3ae   : > { %p4705_p13 = scmp.ne.s32.totalorder %s5536_s24, %s4704_s10  ;;  %p4709_p4 = scmp.lt.u32.totalorder %s5536_s24, %s5585_s4 }
 0x3af   : > { %p4710_p7 = scmp.lt.u32.totalorder %s4708_s21, %s4704_s10  ;;  %p4712_p11 = scmp.lt.u32.totalorder %s4704_s10, %s5536_s24 }
 0x3b0   : > { %p4706_p6 = pnand %p4705_p13, %p5599_p0 }
 0x3b1   : > { %p4711_p8 = por %p4710_p7, %p4709_p4 }
 0x3b2   : > { %p4707_p10 = pneg %p4706_p6 }
 0x3b3   : > { %p4713_p1 = por %p4712_p11, %p4711_p8 }
 0x3b5   : > { %p4714_p3 = pnand %p4713_p1, %p4707_p10 }
 0x3b7   : > { %4717 = shalt.err (!%p4714_p3)
}
 0x3b8   : > { %s4773_s5 = smov 128   ;;  %s4774_s7 = smov 8  }
 0x3b9   : > { %4466 = dma.vmem_to_hbm [thread:$0]  (%p5599_p0), %s5530_s25, 1280, %s5536_s24, %s3337_s29, %s4773_s5, %s4773_s5, %s4774_s7  }
 0x3ba PF: > { %s3365_s28 = sand.u32 1, %s4748_s15   ;;  %p5600_p5 = scmp.ne.s32.totalorder %s5590_s22, 0 }
 0x3bb   : > { %p5601_p9 = scmp.ge.s32.totalorder %s4760_s18, 2  ;;  %s3366_s26 = scalar_lea.sflag [#allocation4], %s3365_s28 }
 0x3bd   : > { %p4480_p12 = pnand %p5601_p9, %p5600_p5 }
 0x3bf   : > { %4743 = dma.done.wait (!%p4480_p12), %s3366_s26, 1280  }
 0x3c0   : > { %4745 = vsyncadd (!%p4480_p12), %s3366_s26, 4294966016  ;;  %p18_p2 = scmp.ge.s32.totalorder %s4910_s11, 4   ;;  %s5602_s15 = smov %s4752_s16 }
 0x3c1   : > { %s5603_s16 = smov %s4756_s17  ;;  %s5604_s17 = smov %s4919_s14 }
 0x3c2   : > { %s5605_s18 = smov %s4910_s11  ;;  %20 = sbr.rel (!%p18_p2) target bundleno = 6 (0x6), region = 97 }
 0x3c9   :  { %3371 = vsyncpa [#allocation3], 1 }
 0x3ca   :  { %3373 = vsyncpa [#allocation3 + $0x1], 1 }
 0x3cb   :  { %3374 = vsyncpa [#allocation6], 1 }
 0x3cc   :  { %3375 = vsyncpa [#allocation4], 1 }
 0x3cd   :  { %3377 = vsyncpa [#allocation4 + $0x1], 1 }

</bundles_post_ra>
